<compile_context>
chip_gen: v6e
topology: v6e:2x2x1
jax: 0.10.0
libtpu: 0.0.40
codegen_flags: <defaults>
</compile_context>

<pallas_src>
import jax
import jax.numpy as jnp
from jax import lax
from jax.experimental import pallas as pl
from jax.experimental.pallas import tpu as pltpu

# ---- model hyper-params (match the module's construction) ----
D_MODEL = 32
N_HEAD = 4
D_K = D_MODEL // N_HEAD          # 8
D_V = D_K                        # 8
D_FF = 64
EPS = 1e-5                       # nn.LayerNorm default
NEG_INF = -1e9                   # masked_fill value used by the reference impl
SCALE = 1.0 / (D_K ** 0.5)       # folded into Wq / bq at init

# ---- packed bf16 weight-slab column offsets (first dim = D_MODEL) ----
_OFF_S_WQKV = 0
_OFF_S_WO = _OFF_S_WQKV + 3 * D_MODEL            # 96
_OFF_E_WQ = _OFF_S_WO + D_MODEL                   # 128
_OFF_E_WKV = _OFF_E_WQ + D_MODEL                  # 160
_OFF_E_WO = _OFF_E_WKV + 2 * D_MODEL              # 224
_OFF_F_W1 = _OFF_E_WO + D_MODEL                   # 256
_W_SLAB_COLS = _OFF_F_W1 + D_FF                   # 320

# ---- packed f32 vector-slab rows (biases / LayerNorm params, one per row) ----
(_R_S_BQKV, _R_S_BO, _R_S_G, _R_S_B,
 _R_E_BQ, _R_E_BKV, _R_E_BO, _R_E_G, _R_E_B,
 _R_F_B1, _R_F_B2, _R_F_G, _R_F_B) = range(13)
_VEC_ROWS = 16
_VEC_COLS = 128


def _layer_norm(x, gamma, beta):
    mu = jnp.mean(x, axis=-1, keepdims=True)
    var = jnp.mean((x - mu) ** 2, axis=-1, keepdims=True)
    return (x - mu) * lax.rsqrt(var + EPS) * gamma + beta


def _attention(q, k, v, mask_add, batch, sq, sk):
    """q:(B*Sq,H*dk)  k,v:(B*Sk,H*d)  mask_add:(B,Sq,Sk) additive f32.

    Scale is pre-folded into the query projection. Returns ctx (B*Sq, H*dv)
    and attention probs laid out (B*Sq, H*Sk) (head-major along lanes so the
    wrapper can reshape/transpose back to (B, H, Sq, Sk)).
    """
    q_bf = q.astype(jnp.bfloat16)
    k_bf = k.astype(jnp.bfloat16)
    v_bf = v.astype(jnp.bfloat16)
    ctx_rows, attn_rows = [], []
    for b in range(batch):                       # static unroll, B tiny
        qb = q_bf[b * sq:(b + 1) * sq]
        kb = k_bf[b * sk:(b + 1) * sk]
        vb = v_bf[b * sk:(b + 1) * sk]
        madd = mask_add[b]                       # (Sq, Sk)
        p_heads, c_heads = [], []
        for h in range(N_HEAD):                  # static unroll, H = 4
            s = lax.dot_general(                 # q @ k^T, no explicit k.T
                qb[:, h * D_K:(h + 1) * D_K],
                kb[:, h * D_K:(h + 1) * D_K],
                (((1,), (1,)), ((), ())),
                preferred_element_type=jnp.float32)      # (Sq, Sk) f32
            s = s + madd                         # additive mask == masked_fill
            s = s - jnp.max(s, axis=-1, keepdims=True)
            e = jnp.exp(s)
            p = e / jnp.sum(e, axis=-1, keepdims=True)   # exact: user-visible
            p_heads.append(p)
            c_heads.append(jnp.dot(p.astype(jnp.bfloat16),
                                   vb[:, h * D_V:(h + 1) * D_V],
                                   preferred_element_type=jnp.float32))
        attn_rows.append(jnp.concatenate(p_heads, axis=-1))   # (Sq, H*Sk)
        ctx_rows.append(jnp.concatenate(c_heads, axis=-1))    # (Sq, H*dv)
    return (jnp.concatenate(ctx_rows, axis=0),
            jnp.concatenate(attn_rows, axis=0))


# ----------------------------------------------------------------------------
# Single fused kernel: both attentions + FFN + LayerNorms, batch folded into M.
# ----------------------------------------------------------------------------
def decoder_layer_kernel(dec_ref, enc_ref, smask_ref, emask_ref,
                         w_ref, w2_ref, vec_ref, out_ref):
    batch, sq, sk = emask_ref.shape

    x = dec_ref[...]                             # (B*Sq, D) f32
    enc = enc_ref[...]                           # (B*Sk, D) f32

    def vec(row, width):                         # (1, width) f32 slab row
        return vec_ref[row:row + 1, :width]

    # enc-dec K/V projection only depends on enc_outputs -> hoisted to the top
    ekv = jnp.dot(enc.astype(jnp.bfloat16), w_ref[:, _OFF_E_WKV:_OFF_E_WO],
                  preferred_element_type=jnp.float32) + vec(_R_E_BKV, 2 * D_MODEL)

    # ---------------- masked self-attention ----------------
    qkv = jnp.dot(x.astype(jnp.bfloat16), w_ref[:, _OFF_S_WQKV:_OFF_S_WO],
                  preferred_element_type=jnp.float32) + vec(_R_S_BQKV, 3 * D_MODEL)
    ctx, sattn = _attention(qkv[:, :D_MODEL],
                            qkv[:, D_MODEL:2 * D_MODEL],
                            qkv[:, 2 * D_MODEL:],
                            smask_ref[...], batch, sq, sq)
    y = jnp.dot(ctx.astype(jnp.bfloat16), w_ref[:, _OFF_S_WO:_OFF_E_WQ],
                preferred_element_type=jnp.float32) + vec(_R_S_BO, D_MODEL)
    x = _layer_norm(y + x, vec(_R_S_G, D_MODEL), vec(_R_S_B, D_MODEL))

    # ---------------- encoder-decoder attention ----------------
    q = jnp.dot(x.astype(jnp.bfloat16), w_ref[:, _OFF_E_WQ:_OFF_E_WKV],
                preferred_element_type=jnp.float32) + vec(_R_E_BQ, D_MODEL)
    ctx, eattn = _attention(q, ekv[:, :D_MODEL], ekv[:, D_MODEL:],
                            emask_ref[...], batch, sq, sk)
    y = jnp.dot(ctx.astype(jnp.bfloat16), w_ref[:, _OFF_E_WO:_OFF_F_W1],
                preferred_element_type=jnp.float32) + vec(_R_E_BO, D_MODEL)
    x = _layer_norm(y + x, vec(_R_E_G, D_MODEL), vec(_R_E_B, D_MODEL))

    # -------- position-wise FFN (Conv1d kernel_size=1 == feature matmul) -----
    h = jnp.dot(x.astype(jnp.bfloat16), w_ref[:, _OFF_F_W1:_W_SLAB_COLS],
                preferred_element_type=jnp.float32) + vec(_R_F_B1, D_FF)
    h = jnp.maximum(h, 0.0)                                    # ReLU
    y = jnp.dot(h.astype(jnp.bfloat16), w2_ref[...],
                preferred_element_type=jnp.float32) + vec(_R_F_B2, D_MODEL)
    out = _layer_norm(y + x, vec(_R_F_G, D_MODEL), vec(_R_F_B, D_MODEL))

    # ---------------- lane-dense packed writeback ----------------
    parts = [out, sattn, eattn]
    used = D_MODEL + N_HEAD * sq + N_HEAD * sk
    pad_w = out_ref.shape[1] - used
    if pad_w > 0:
        parts.append(jnp.zeros((out.shape[0], pad_w), jnp.float32))
    out_ref[...] = jnp.concatenate(parts, axis=-1)


# ----------------------------------------------------------------------------
# pallas_call wrapper (grid-less: whole problem is one kernel invocation)
# ----------------------------------------------------------------------------
def decoder_layer(dec_inputs, enc_outputs, dec_self_attn_mask,
                  dec_enc_attn_mask, params):
    B, Sq, D = dec_inputs.shape
    Sk = enc_outputs.shape[1]
    assert D == D_MODEL

    dec2d = dec_inputs.reshape(B * Sq, D).astype(jnp.float32)
    enc2d = enc_outputs.reshape(B * Sk, D).astype(jnp.float32)
    # additive masks: masked positions (mask == 1) get -1e9 added to scores
    smask_add = dec_self_attn_mask.astype(jnp.float32) * NEG_INF
    emask_add = dec_enc_attn_mask.astype(jnp.float32) * NEG_INF

    used = D_MODEL + N_HEAD * Sq + N_HEAD * Sk
    out_w = ((used + 127) // 128) * 128          # lane-dense output slab width

    vmem_spec = pl.BlockSpec(memory_space=pltpu.MemorySpace.VMEM)
    packed = pl.pallas_call(
        decoder_layer_kernel,
        out_shape=jax.ShapeDtypeStruct((B * Sq, out_w), jnp.float32),
        in_specs=[vmem_spec] * 7,
        out_specs=vmem_spec,
    )(dec2d, enc2d, smask_add, emask_add,
      params["w_slab"], params["w_ff2"], params["vec_slab"])

    out = packed[:, :D_MODEL].reshape(B, Sq, D_MODEL)
    sattn = packed[:, D_MODEL:D_MODEL + N_HEAD * Sq]
    sattn = sattn.reshape(B, Sq, N_HEAD, Sq).transpose(0, 2, 1, 3)
    eattn = packed[:, D_MODEL + N_HEAD * Sq:used]
    eattn = eattn.reshape(B, Sq, N_HEAD, Sk).transpose(0, 2, 1, 3)
    return out, sattn, eattn


# ----------------------------------------------------------------------------
# deterministic synthetic parameter init, stored pre-packed:
#   w_slab  (32, 320) bf16 : [s_Wq|s_Wk|s_Wv | s_Wo | e_Wq | e_Wk|e_Wv | e_Wo | f_W1]
#   w_ff2   (64, 32)  bf16 : FFN down-projection
#   vec_slab(16, 128) f32  : one bias / gamma / beta vector per row
# 1/sqrt(d_k) is folded into Wq / bq.
# ----------------------------------------------------------------------------
def init_decoder_params(key):
    ks = jax.random.split(key, 20)

    def lin(k, fi, fo):
        return jax.random.normal(k, (fi, fo), jnp.float32) / jnp.sqrt(fi)

    def bias(k, n):
        return 0.01 * jax.random.normal(k, (1, n), jnp.float32)

    # masked self-attention
    s_wq = lin(ks[0], D_MODEL, N_HEAD * D_K) * SCALE
    s_bq = bias(ks[1], N_HEAD * D_K) * SCALE
    s_wk = lin(ks[2], D_MODEL, N_HEAD * D_K)
    s_bk = bias(ks[3], N_HEAD * D_K)
    s_wv = lin(ks[4], D_MODEL, N_HEAD * D_V)
    s_bv = bias(ks[5], N_HEAD * D_V)
    s_wo = lin(ks[6], N_HEAD * D_V, D_MODEL)
    s_bo = bias(ks[7], D_MODEL)
    # encoder-decoder attention
    e_wq = lin(ks[8], D_MODEL, N_HEAD * D_K) * SCALE
    e_bq = bias(ks[9], N_HEAD * D_K) * SCALE
    e_wk = lin(ks[10], D_MODEL, N_HEAD * D_K)
    e_bk = bias(ks[11], N_HEAD * D_K)
    e_wv = lin(ks[12], D_MODEL, N_HEAD * D_V)
    e_bv = bias(ks[13], N_HEAD * D_V)
    e_wo = lin(ks[14], N_HEAD * D_V, D_MODEL)
    e_bo = bias(ks[15], D_MODEL)
    # position-wise FFN (Conv1d kernel_size=1 over channels == matmul)
    f_w1 = lin(ks[16], D_MODEL, D_FF)
    f_b1 = bias(ks[17], D_FF)
    f_w2 = lin(ks[18], D_FF, D_MODEL)
    f_b2 = bias(ks[19], D_MODEL)

    ones = jnp.ones((1, D_MODEL), jnp.float32)
    zeros = jnp.zeros((1, D_MODEL), jnp.float32)

    w_slab = jnp.concatenate(
        [s_wq, s_wk, s_wv, s_wo, e_wq, e_wk, e_wv, e_wo, f_w1],
        axis=1).astype(jnp.bfloat16)
    assert w_slab.shape == (D_MODEL, _W_SLAB_COLS)

    def row(v):
        return jnp.pad(v, ((0, 0), (0, _VEC_COLS - v.shape[1])))

    vec_slab = jnp.concatenate([
        row(jnp.concatenate([s_bq, s_bk, s_bv], axis=1)),   # _R_S_BQKV
        row(s_bo), row(ones), row(zeros),                   # _R_S_BO/_G/_B
        row(e_bq),                                          # _R_E_BQ
        row(jnp.concatenate([e_bk, e_bv], axis=1)),         # _R_E_BKV
        row(e_bo), row(ones), row(zeros),                   # _R_E_BO/_G/_B
        row(f_b1), row(f_b2), row(ones), row(zeros),        # _R_F_*
        jnp.zeros((_VEC_ROWS - 13, _VEC_COLS), jnp.float32),
    ], axis=0)
    assert vec_slab.shape == (_VEC_ROWS, _VEC_COLS)

    return dict(w_slab=w_slab,
                w_ff2=f_w2.astype(jnp.bfloat16),
                vec_slab=vec_slab)


if __name__ == "__main__":
    B, S = 2, 8
    root = jax.random.PRNGKey(0)
    k_params, k_dec, k_enc = jax.random.split(root, 3)

    params = init_decoder_params(k_params)
    dec_inputs = jax.random.normal(k_dec, (B, S, D_MODEL), jnp.float32)
    enc_outputs = jax.random.normal(k_enc, (B, S, D_MODEL), jnp.float32)

    # causal (look-ahead) mask for decoder self-attention: 1.0 => masked
    causal = jnp.triu(jnp.ones((S, S), jnp.float32), k=1)
    dec_self_attn_mask = jnp.broadcast_to(causal, (B, S, S))
    # no padding mask for encoder-decoder attention in this synthetic example
    dec_enc_attn_mask = jnp.zeros((B, S, S), jnp.float32)

    fwd = jax.jit(decoder_layer)
    out, self_attn, enc_attn = fwd(dec_inputs, enc_outputs,
                                   dec_self_attn_mask, dec_enc_attn_mask,
                                   params)
    jax.block_until_ready((out, self_attn, enc_attn))

    assert out.shape == (B, S, D_MODEL)
    assert self_attn.shape == (B, N_HEAD, S, S)
    assert enc_attn.shape == (B, N_HEAD, S, S)
    assert bool(jnp.all(jnp.isfinite(out)))
    assert bool(jnp.allclose(jnp.sum(self_attn, axis=-1), 1.0, atol=1e-3))
    assert bool(jnp.allclose(jnp.sum(enc_attn, axis=-1), 1.0, atol=1e-3))
    # causal structure preserved: future positions get ~0 probability
    assert bool(jnp.max(jnp.abs(self_attn * causal[None, None])) < 1e-6)
    print("KERNEL_OK")
</pallas_src>

<mosaic_0001>
module attributes {stable_mosaic.version = 11 : i64} {
  func.func @decoder_layer_kernel(%arg0: memref<16x32xf32, #tpu.memory_space<vmem>>, %arg1: memref<16x32xf32, #tpu.memory_space<vmem>>, %arg2: memref<2x8x8xf32, #tpu.memory_space<vmem>>, %arg3: memref<2x8x8xf32, #tpu.memory_space<vmem>>, %arg4: memref<32x320xbf16, #tpu.memory_space<vmem>>, %arg5: memref<64x32xbf16, #tpu.memory_space<vmem>>, %arg6: memref<16x128xf32, #tpu.memory_space<vmem>>, %arg7: memref<16x128xf32, #tpu.memory_space<vmem>>) attributes {dimension_semantics = [], scalar_prefetch = 0 : i64, scratch_operands = 0 : i64, tpu.core_type = #tpu.core_type<tc>} {
    %c0 = arith.constant 0 : index
    %c0_0 = arith.constant 0 : index
    %0 = vector.load %arg0[%c0, %c0_0] : memref<16x32xf32, #tpu.memory_space<vmem>>, vector<16x32xf32>
    %c0_1 = arith.constant 0 : index
    %c0_2 = arith.constant 0 : index
    %1 = vector.load %arg1[%c0_1, %c0_2] : memref<16x32xf32, #tpu.memory_space<vmem>>, vector<16x32xf32>
    %2 = arith.truncf %1 : vector<16x32xf32> to vector<16x32xbf16>
    %c0_3 = arith.constant 0 : index
    %c160 = arith.constant 160 : index
    %3 = vector.load %arg4[%c0_3, %c160] : memref<32x320xbf16, #tpu.memory_space<vmem>>, vector<32x64xbf16>
    %cst = arith.constant dense<0.000000e+00> : vector<16x64xf32>
    %4 = tpu.matmul %2, %3, %cst {dimension_numbers = #tpu.dot_dimension_numbers<[1], [0], [0], [1], [0, 0, 1, 1], [], []>} : vector<16x32xbf16>, vector<32x64xbf16>, vector<16x64xf32> -> vector<16x64xf32>
    %c5 = arith.constant 5 : index
    %c0_4 = arith.constant 0 : index
    %5 = vector.load %arg6[%c5, %c0_4] : memref<16x128xf32, #tpu.memory_space<vmem>>, vector<1x64xf32>
    %6 = vector.broadcast %5 : vector<1x64xf32> to vector<16x64xf32>
    %7 = arith.addf %4, %6 : vector<16x64xf32>
    %8 = arith.truncf %0 : vector<16x32xf32> to vector<16x32xbf16>
    %c0_5 = arith.constant 0 : index
    %c0_6 = arith.constant 0 : index
    %9 = vector.load %arg4[%c0_5, %c0_6] : memref<32x320xbf16, #tpu.memory_space<vmem>>, vector<32x96xbf16>
    %cst_7 = arith.constant dense<0.000000e+00> : vector<16x96xf32>
    %10 = tpu.matmul %8, %9, %cst_7 {dimension_numbers = #tpu.dot_dimension_numbers<[1], [0], [0], [1], [0, 0, 1, 1], [], []>} : vector<16x32xbf16>, vector<32x96xbf16>, vector<16x96xf32> -> vector<16x96xf32>
    %c0_8 = arith.constant 0 : index
    %c0_9 = arith.constant 0 : index
    %11 = vector.load %arg6[%c0_8, %c0_9] : memref<16x128xf32, #tpu.memory_space<vmem>>, vector<1x96xf32>
    %12 = vector.broadcast %11 : vector<1x96xf32> to vector<16x96xf32>
    %13 = arith.addf %10, %12 : vector<16x96xf32>
    %14 = vector.extract_strided_slice %13 {offsets = [0, 0], sizes = [16, 32], strides = [1, 1]} : vector<16x96xf32> to vector<16x32xf32>
    %15 = vector.extract_strided_slice %13 {offsets = [0, 32], sizes = [16, 32], strides = [1, 1]} : vector<16x96xf32> to vector<16x32xf32>
    %16 = vector.extract_strided_slice %13 {offsets = [0, 64], sizes = [16, 32], strides = [1, 1]} : vector<16x96xf32> to vector<16x32xf32>
    %c0_10 = arith.constant 0 : index
    %c0_11 = arith.constant 0 : index
    %c0_12 = arith.constant 0 : index
    %17 = vector.load %arg2[%c0_10, %c0_11, %c0_12] : memref<2x8x8xf32, #tpu.memory_space<vmem>>, vector<2x8x8xf32>
    %18 = arith.truncf %14 : vector<16x32xf32> to vector<16x32xbf16>
    %19 = arith.truncf %15 : vector<16x32xf32> to vector<16x32xbf16>
    %20 = arith.truncf %16 : vector<16x32xf32> to vector<16x32xbf16>
    %21 = vector.extract_strided_slice %18 {offsets = [0, 0], sizes = [8, 32], strides = [1, 1]} : vector<16x32xbf16> to vector<8x32xbf16>
    %22 = vector.extract_strided_slice %19 {offsets = [0, 0], sizes = [8, 32], strides = [1, 1]} : vector<16x32xbf16> to vector<8x32xbf16>
    %23 = vector.extract_strided_slice %20 {offsets = [0, 0], sizes = [8, 32], strides = [1, 1]} : vector<16x32xbf16> to vector<8x32xbf16>
    %24 = vector.extract_strided_slice %17 {offsets = [0, 0, 0], sizes = [1, 8, 8], strides = [1, 1, 1]} : vector<2x8x8xf32> to vector<1x8x8xf32>
    %25 = vector.shape_cast %24 : vector<1x8x8xf32> to vector<8x8xf32>
    %26 = vector.extract_strided_slice %21 {offsets = [0, 0], sizes = [8, 8], strides = [1, 1]} : vector<8x32xbf16> to vector<8x8xbf16>
    %27 = vector.extract_strided_slice %22 {offsets = [0, 0], sizes = [8, 8], strides = [1, 1]} : vector<8x32xbf16> to vector<8x8xbf16>
    %cst_13 = arith.constant dense<0.000000e+00> : vector<8x8xf32>
    %28 = tpu.matmul %26, %27, %cst_13 {dimension_numbers = #tpu.dot_dimension_numbers<[1], [1], [0], [0], [0, 0, 1, 0], [], []>} : vector<8x8xbf16>, vector<8x8xbf16>, vector<8x8xf32> -> vector<8x8xf32>
    %29 = arith.addf %28, %25 : vector<8x8xf32>
    %cst_14 = arith.constant dense<0xFF800000> : vector<8xf32>
    %30 = vector.multi_reduction <maximumf>, %29, %cst_14 [1] : vector<8x8xf32> to vector<8xf32>
    %31 = vector.shape_cast %30 : vector<8xf32> to vector<8x1xf32>
    %32 = vector.broadcast %31 : vector<8x1xf32> to vector<8x8xf32>
    %33 = arith.subf %29, %32 : vector<8x8xf32>
    %34 = math.exp %33 : vector<8x8xf32>
    %cst_15 = arith.constant dense<0.000000e+00> : vector<8xf32>
    %35 = vector.multi_reduction <add>, %34, %cst_15 [1] : vector<8x8xf32> to vector<8xf32>
    %36 = vector.shape_cast %35 : vector<8xf32> to vector<8x1xf32>
    %37 = vector.broadcast %36 : vector<8x1xf32> to vector<8x8xf32>
    %38 = arith.divf %34, %37 : vector<8x8xf32>
    %39 = arith.truncf %38 : vector<8x8xf32> to vector<8x8xbf16>
    %40 = vector.extract_strided_slice %23 {offsets = [0, 0], sizes = [8, 8], strides = [1, 1]} : vector<8x32xbf16> to vector<8x8xbf16>
    %cst_16 = arith.constant dense<0.000000e+00> : vector<8x8xf32>
    %41 = tpu.matmul %39, %40, %cst_16 {dimension_numbers = #tpu.dot_dimension_numbers<[1], [0], [0], [1], [0, 0, 1, 1], [], []>} : vector<8x8xbf16>, vector<8x8xbf16>, vector<8x8xf32> -> vector<8x8xf32>
    %42 = vector.extract_strided_slice %21 {offsets = [0, 8], sizes = [8, 8], strides = [1, 1]} : vector<8x32xbf16> to vector<8x8xbf16>
    %43 = vector.extract_strided_slice %22 {offsets = [0, 8], sizes = [8, 8], strides = [1, 1]} : vector<8x32xbf16> to vector<8x8xbf16>
    %cst_17 = arith.constant dense<0.000000e+00> : vector<8x8xf32>
    %44 = tpu.matmul %42, %43, %cst_17 {dimension_numbers = #tpu.dot_dimension_numbers<[1], [1], [0], [0], [0, 0, 1, 0], [], []>} : vector<8x8xbf16>, vector<8x8xbf16>, vector<8x8xf32> -> vector<8x8xf32>
    %45 = arith.addf %44, %25 : vector<8x8xf32>
    %cst_18 = arith.constant dense<0xFF800000> : vector<8xf32>
    %46 = vector.multi_reduction <maximumf>, %45, %cst_18 [1] : vector<8x8xf32> to vector<8xf32>
    %47 = vector.shape_cast %46 : vector<8xf32> to vector<8x1xf32>
    %48 = vector.broadcast %47 : vector<8x1xf32> to vector<8x8xf32>
    %49 = arith.subf %45, %48 : vector<8x8xf32>
    %50 = math.exp %49 : vector<8x8xf32>
    %cst_19 = arith.constant dense<0.000000e+00> : vector<8xf32>
    %51 = vector.multi_reduction <add>, %50, %cst_19 [1] : vector<8x8xf32> to vector<8xf32>
    %52 = vector.shape_cast %51 : vector<8xf32> to vector<8x1xf32>
    %53 = vector.broadcast %52 : vector<8x1xf32> to vector<8x8xf32>
    %54 = arith.divf %50, %53 : vector<8x8xf32>
    %55 = arith.truncf %54 : vector<8x8xf32> to vector<8x8xbf16>
    %56 = vector.extract_strided_slice %23 {offsets = [0, 8], sizes = [8, 8], strides = [1, 1]} : vector<8x32xbf16> to vector<8x8xbf16>
    %cst_20 = arith.constant dense<0.000000e+00> : vector<8x8xf32>
    %57 = tpu.matmul %55, %56, %cst_20 {dimension_numbers = #tpu.dot_dimension_numbers<[1], [0], [0], [1], [0, 0, 1, 1], [], []>} : vector<8x8xbf16>, vector<8x8xbf16>, vector<8x8xf32> -> vector<8x8xf32>
    %58 = vector.extract_strided_slice %21 {offsets = [0, 16], sizes = [8, 8], strides = [1, 1]} : vector<8x32xbf16> to vector<8x8xbf16>
    %59 = vector.extract_strided_slice %22 {offsets = [0, 16], sizes = [8, 8], strides = [1, 1]} : vector<8x32xbf16> to vector<8x8xbf16>
    %cst_21 = arith.constant dense<0.000000e+00> : vector<8x8xf32>
    %60 = tpu.matmul %58, %59, %cst_21 {dimension_numbers = #tpu.dot_dimension_numbers<[1], [1], [0], [0], [0, 0, 1, 0], [], []>} : vector<8x8xbf16>, vector<8x8xbf16>, vector<8x8xf32> -> vector<8x8xf32>
    %61 = arith.addf %60, %25 : vector<8x8xf32>
    %cst_22 = arith.constant dense<0xFF800000> : vector<8xf32>
    %62 = vector.multi_reduction <maximumf>, %61, %cst_22 [1] : vector<8x8xf32> to vector<8xf32>
    %63 = vector.shape_cast %62 : vector<8xf32> to vector<8x1xf32>
    %64 = vector.broadcast %63 : vector<8x1xf32> to vector<8x8xf32>
    %65 = arith.subf %61, %64 : vector<8x8xf32>
    %66 = math.exp %65 : vector<8x8xf32>
    %cst_23 = arith.constant dense<0.000000e+00> : vector<8xf32>
    %67 = vector.multi_reduction <add>, %66, %cst_23 [1] : vector<8x8xf32> to vector<8xf32>
    %68 = vector.shape_cast %67 : vector<8xf32> to vector<8x1xf32>
    %69 = vector.broadcast %68 : vector<8x1xf32> to vector<8x8xf32>
    %70 = arith.divf %66, %69 : vector<8x8xf32>
    %71 = arith.truncf %70 : vector<8x8xf32> to vector<8x8xbf16>
    %72 = vector.extract_strided_slice %23 {offsets = [0, 16], sizes = [8, 8], strides = [1, 1]} : vector<8x32xbf16> to vector<8x8xbf16>
    %cst_24 = arith.constant dense<0.000000e+00> : vector<8x8xf32>
    %73 = tpu.matmul %71, %72, %cst_24 {dimension_numbers = #tpu.dot_dimension_numbers<[1], [0], [0], [1], [0, 0, 1, 1], [], []>} : vector<8x8xbf16>, vector<8x8xbf16>, vector<8x8xf32> -> vector<8x8xf32>
    %74 = vector.extract_strided_slice %21 {offsets = [0, 24], sizes = [8, 8], strides = [1, 1]} : vector<8x32xbf16> to vector<8x8xbf16>
    %75 = vector.extract_strided_slice %22 {offsets = [0, 24], sizes = [8, 8], strides = [1, 1]} : vector<8x32xbf16> to vector<8x8xbf16>
    %cst_25 = arith.constant dense<0.000000e+00> : vector<8x8xf32>
    %76 = tpu.matmul %74, %75, %cst_25 {dimension_numbers = #tpu.dot_dimension_numbers<[1], [1], [0], [0], [0, 0, 1, 0], [], []>} : vector<8x8xbf16>, vector<8x8xbf16>, vector<8x8xf32> -> vector<8x8xf32>
    %77 = arith.addf %76, %25 : vector<8x8xf32>
    %cst_26 = arith.constant dense<0xFF800000> : vector<8xf32>
    %78 = vector.multi_reduction <maximumf>, %77, %cst_26 [1] : vector<8x8xf32> to vector<8xf32>
    %79 = vector.shape_cast %78 : vector<8xf32> to vector<8x1xf32>
    %80 = vector.broadcast %79 : vector<8x1xf32> to vector<8x8xf32>
    %81 = arith.subf %77, %80 : vector<8x8xf32>
    %82 = math.exp %81 : vector<8x8xf32>
    %cst_27 = arith.constant dense<0.000000e+00> : vector<8xf32>
    %83 = vector.multi_reduction <add>, %82, %cst_27 [1] : vector<8x8xf32> to vector<8xf32>
    %84 = vector.shape_cast %83 : vector<8xf32> to vector<8x1xf32>
    %85 = vector.broadcast %84 : vector<8x1xf32> to vector<8x8xf32>
    %86 = arith.divf %82, %85 : vector<8x8xf32>
    %87 = arith.truncf %86 : vector<8x8xf32> to vector<8x8xbf16>
    %88 = vector.extract_strided_slice %23 {offsets = [0, 24], sizes = [8, 8], strides = [1, 1]} : vector<8x32xbf16> to vector<8x8xbf16>
    %cst_28 = arith.constant dense<0.000000e+00> : vector<8x8xf32>
    %89 = tpu.matmul %87, %88, %cst_28 {dimension_numbers = #tpu.dot_dimension_numbers<[1], [0], [0], [1], [0, 0, 1, 1], [], []>} : vector<8x8xbf16>, vector<8x8xbf16>, vector<8x8xf32> -> vector<8x8xf32>
    %90 = tpu.concatenate %38, %54, %70, %86 in 1 : vector<8x8xf32>, vector<8x8xf32>, vector<8x8xf32>, vector<8x8xf32> -> vector<8x32xf32>
    %91 = tpu.concatenate %41, %57, %73, %89 in 1 : vector<8x8xf32>, vector<8x8xf32>, vector<8x8xf32>, vector<8x8xf32> -> vector<8x32xf32>
    %92 = vector.extract_strided_slice %18 {offsets = [8, 0], sizes = [8, 32], strides = [1, 1]} : vector<16x32xbf16> to vector<8x32xbf16>
    %93 = vector.extract_strided_slice %19 {offsets = [8, 0], sizes = [8, 32], strides = [1, 1]} : vector<16x32xbf16> to vector<8x32xbf16>
    %94 = vector.extract_strided_slice %20 {offsets = [8, 0], sizes = [8, 32], strides = [1, 1]} : vector<16x32xbf16> to vector<8x32xbf16>
    %95 = vector.extract_strided_slice %17 {offsets = [1, 0, 0], sizes = [1, 8, 8], strides = [1, 1, 1]} : vector<2x8x8xf32> to vector<1x8x8xf32>
    %96 = vector.shape_cast %95 : vector<1x8x8xf32> to vector<8x8xf32>
    %97 = vector.extract_strided_slice %92 {offsets = [0, 0], sizes = [8, 8], strides = [1, 1]} : vector<8x32xbf16> to vector<8x8xbf16>
    %98 = vector.extract_strided_slice %93 {offsets = [0, 0], sizes = [8, 8], strides = [1, 1]} : vector<8x32xbf16> to vector<8x8xbf16>
    %cst_29 = arith.constant dense<0.000000e+00> : vector<8x8xf32>
    %99 = tpu.matmul %97, %98, %cst_29 {dimension_numbers = #tpu.dot_dimension_numbers<[1], [1], [0], [0], [0, 0, 1, 0], [], []>} : vector<8x8xbf16>, vector<8x8xbf16>, vector<8x8xf32> -> vector<8x8xf32>
    %100 = arith.addf %99, %96 : vector<8x8xf32>
    %cst_30 = arith.constant dense<0xFF800000> : vector<8xf32>
    %101 = vector.multi_reduction <maximumf>, %100, %cst_30 [1] : vector<8x8xf32> to vector<8xf32>
    %102 = vector.shape_cast %101 : vector<8xf32> to vector<8x1xf32>
    %103 = vector.broadcast %102 : vector<8x1xf32> to vector<8x8xf32>
    %104 = arith.subf %100, %103 : vector<8x8xf32>
    %105 = math.exp %104 : vector<8x8xf32>
    %cst_31 = arith.constant dense<0.000000e+00> : vector<8xf32>
    %106 = vector.multi_reduction <add>, %105, %cst_31 [1] : vector<8x8xf32> to vector<8xf32>
    %107 = vector.shape_cast %106 : vector<8xf32> to vector<8x1xf32>
    %108 = vector.broadcast %107 : vector<8x1xf32> to vector<8x8xf32>
    %109 = arith.divf %105, %108 : vector<8x8xf32>
    %110 = arith.truncf %109 : vector<8x8xf32> to vector<8x8xbf16>
    %111 = vector.extract_strided_slice %94 {offsets = [0, 0], sizes = [8, 8], strides = [1, 1]} : vector<8x32xbf16> to vector<8x8xbf16>
    %cst_32 = arith.constant dense<0.000000e+00> : vector<8x8xf32>
    %112 = tpu.matmul %110, %111, %cst_32 {dimension_numbers = #tpu.dot_dimension_numbers<[1], [0], [0], [1], [0, 0, 1, 1], [], []>} : vector<8x8xbf16>, vector<8x8xbf16>, vector<8x8xf32> -> vector<8x8xf32>
    %113 = vector.extract_strided_slice %92 {offsets = [0, 8], sizes = [8, 8], strides = [1, 1]} : vector<8x32xbf16> to vector<8x8xbf16>
    %114 = vector.extract_strided_slice %93 {offsets = [0, 8], sizes = [8, 8], strides = [1, 1]} : vector<8x32xbf16> to vector<8x8xbf16>
    %cst_33 = arith.constant dense<0.000000e+00> : vector<8x8xf32>
    %115 = tpu.matmul %113, %114, %cst_33 {dimension_numbers = #tpu.dot_dimension_numbers<[1], [1], [0], [0], [0, 0, 1, 0], [], []>} : vector<8x8xbf16>, vector<8x8xbf16>, vector<8x8xf32> -> vector<8x8xf32>
    %116 = arith.addf %115, %96 : vector<8x8xf32>
    %cst_34 = arith.constant dense<0xFF800000> : vector<8xf32>
    %117 = vector.multi_reduction <maximumf>, %116, %cst_34 [1] : vector<8x8xf32> to vector<8xf32>
    %118 = vector.shape_cast %117 : vector<8xf32> to vector<8x1xf32>
    %119 = vector.broadcast %118 : vector<8x1xf32> to vector<8x8xf32>
    %120 = arith.subf %116, %119 : vector<8x8xf32>
    %121 = math.exp %120 : vector<8x8xf32>
    %cst_35 = arith.constant dense<0.000000e+00> : vector<8xf32>
    %122 = vector.multi_reduction <add>, %121, %cst_35 [1] : vector<8x8xf32> to vector<8xf32>
    %123 = vector.shape_cast %122 : vector<8xf32> to vector<8x1xf32>
    %124 = vector.broadcast %123 : vector<8x1xf32> to vector<8x8xf32>
    %125 = arith.divf %121, %124 : vector<8x8xf32>
    %126 = arith.truncf %125 : vector<8x8xf32> to vector<8x8xbf16>
    %127 = vector.extract_strided_slice %94 {offsets = [0, 8], sizes = [8, 8], strides = [1, 1]} : vector<8x32xbf16> to vector<8x8xbf16>
    %cst_36 = arith.constant dense<0.000000e+00> : vector<8x8xf32>
    %128 = tpu.matmul %126, %127, %cst_36 {dimension_numbers = #tpu.dot_dimension_numbers<[1], [0], [0], [1], [0, 0, 1, 1], [], []>} : vector<8x8xbf16>, vector<8x8xbf16>, vector<8x8xf32> -> vector<8x8xf32>
    %129 = vector.extract_strided_slice %92 {offsets = [0, 16], sizes = [8, 8], strides = [1, 1]} : vector<8x32xbf16> to vector<8x8xbf16>
    %130 = vector.extract_strided_slice %93 {offsets = [0, 16], sizes = [8, 8], strides = [1, 1]} : vector<8x32xbf16> to vector<8x8xbf16>
    %cst_37 = arith.constant dense<0.000000e+00> : vector<8x8xf32>
    %131 = tpu.matmul %129, %130, %cst_37 {dimension_numbers = #tpu.dot_dimension_numbers<[1], [1], [0], [0], [0, 0, 1, 0], [], []>} : vector<8x8xbf16>, vector<8x8xbf16>, vector<8x8xf32> -> vector<8x8xf32>
    %132 = arith.addf %131, %96 : vector<8x8xf32>
    %cst_38 = arith.constant dense<0xFF800000> : vector<8xf32>
    %133 = vector.multi_reduction <maximumf>, %132, %cst_38 [1] : vector<8x8xf32> to vector<8xf32>
    %134 = vector.shape_cast %133 : vector<8xf32> to vector<8x1xf32>
    %135 = vector.broadcast %134 : vector<8x1xf32> to vector<8x8xf32>
    %136 = arith.subf %132, %135 : vector<8x8xf32>
    %137 = math.exp %136 : vector<8x8xf32>
    %cst_39 = arith.constant dense<0.000000e+00> : vector<8xf32>
    %138 = vector.multi_reduction <add>, %137, %cst_39 [1] : vector<8x8xf32> to vector<8xf32>
    %139 = vector.shape_cast %138 : vector<8xf32> to vector<8x1xf32>
    %140 = vector.broadcast %139 : vector<8x1xf32> to vector<8x8xf32>
    %141 = arith.divf %137, %140 : vector<8x8xf32>
    %142 = arith.truncf %141 : vector<8x8xf32> to vector<8x8xbf16>
    %143 = vector.extract_strided_slice %94 {offsets = [0, 16], sizes = [8, 8], strides = [1, 1]} : vector<8x32xbf16> to vector<8x8xbf16>
    %cst_40 = arith.constant dense<0.000000e+00> : vector<8x8xf32>
    %144 = tpu.matmul %142, %143, %cst_40 {dimension_numbers = #tpu.dot_dimension_numbers<[1], [0], [0], [1], [0, 0, 1, 1], [], []>} : vector<8x8xbf16>, vector<8x8xbf16>, vector<8x8xf32> -> vector<8x8xf32>
    %145 = vector.extract_strided_slice %92 {offsets = [0, 24], sizes = [8, 8], strides = [1, 1]} : vector<8x32xbf16> to vector<8x8xbf16>
    %146 = vector.extract_strided_slice %93 {offsets = [0, 24], sizes = [8, 8], strides = [1, 1]} : vector<8x32xbf16> to vector<8x8xbf16>
    %cst_41 = arith.constant dense<0.000000e+00> : vector<8x8xf32>
    %147 = tpu.matmul %145, %146, %cst_41 {dimension_numbers = #tpu.dot_dimension_numbers<[1], [1], [0], [0], [0, 0, 1, 0], [], []>} : vector<8x8xbf16>, vector<8x8xbf16>, vector<8x8xf32> -> vector<8x8xf32>
    %148 = arith.addf %147, %96 : vector<8x8xf32>
    %cst_42 = arith.constant dense<0xFF800000> : vector<8xf32>
    %149 = vector.multi_reduction <maximumf>, %148, %cst_42 [1] : vector<8x8xf32> to vector<8xf32>
    %150 = vector.shape_cast %149 : vector<8xf32> to vector<8x1xf32>
    %151 = vector.broadcast %150 : vector<8x1xf32> to vector<8x8xf32>
    %152 = arith.subf %148, %151 : vector<8x8xf32>
    %153 = math.exp %152 : vector<8x8xf32>
    %cst_43 = arith.constant dense<0.000000e+00> : vector<8xf32>
    %154 = vector.multi_reduction <add>, %153, %cst_43 [1] : vector<8x8xf32> to vector<8xf32>
    %155 = vector.shape_cast %154 : vector<8xf32> to vector<8x1xf32>
    %156 = vector.broadcast %155 : vector<8x1xf32> to vector<8x8xf32>
    %157 = arith.divf %153, %156 : vector<8x8xf32>
    %158 = arith.truncf %157 : vector<8x8xf32> to vector<8x8xbf16>
    %159 = vector.extract_strided_slice %94 {offsets = [0, 24], sizes = [8, 8], strides = [1, 1]} : vector<8x32xbf16> to vector<8x8xbf16>
    %cst_44 = arith.constant dense<0.000000e+00> : vector<8x8xf32>
    %160 = tpu.matmul %158, %159, %cst_44 {dimension_numbers = #tpu.dot_dimension_numbers<[1], [0], [0], [1], [0, 0, 1, 1], [], []>} : vector<8x8xbf16>, vector<8x8xbf16>, vector<8x8xf32> -> vector<8x8xf32>
    %161 = tpu.concatenate %109, %125, %141, %157 in 1 : vector<8x8xf32>, vector<8x8xf32>, vector<8x8xf32>, vector<8x8xf32> -> vector<8x32xf32>
    %162 = tpu.concatenate %112, %128, %144, %160 in 1 : vector<8x8xf32>, vector<8x8xf32>, vector<8x8xf32>, vector<8x8xf32> -> vector<8x32xf32>
    %163 = tpu.concatenate %91, %162 in 0 : vector<8x32xf32>, vector<8x32xf32> -> vector<16x32xf32>
    %164 = tpu.concatenate %90, %161 in 0 : vector<8x32xf32>, vector<8x32xf32> -> vector<16x32xf32>
    %165 = arith.truncf %163 : vector<16x32xf32> to vector<16x32xbf16>
    %c0_45 = arith.constant 0 : index
    %c96 = arith.constant 96 : index
    %166 = vector.load %arg4[%c0_45, %c96] : memref<32x320xbf16, #tpu.memory_space<vmem>>, vector<32x32xbf16>
    %cst_46 = arith.constant dense<0.000000e+00> : vector<16x32xf32>
    %167 = tpu.matmul %165, %166, %cst_46 {dimension_numbers = #tpu.dot_dimension_numbers<[1], [0], [0], [1], [0, 0, 1, 1], [], []>} : vector<16x32xbf16>, vector<32x32xbf16>, vector<16x32xf32> -> vector<16x32xf32>
    %c1 = arith.constant 1 : index
    %c0_47 = arith.constant 0 : index
    %168 = vector.load %arg6[%c1, %c0_47] : memref<16x128xf32, #tpu.memory_space<vmem>>, vector<1x32xf32>
    %169 = vector.broadcast %168 : vector<1x32xf32> to vector<16x32xf32>
    %170 = arith.addf %167, %169 : vector<16x32xf32>
    %171 = arith.addf %170, %0 : vector<16x32xf32>
    %c2 = arith.constant 2 : index
    %c0_48 = arith.constant 0 : index
    %172 = vector.load %arg6[%c2, %c0_48] : memref<16x128xf32, #tpu.memory_space<vmem>>, vector<1x32xf32>
    %c3 = arith.constant 3 : index
    %c0_49 = arith.constant 0 : index
    %173 = vector.load %arg6[%c3, %c0_49] : memref<16x128xf32, #tpu.memory_space<vmem>>, vector<1x32xf32>
    %cst_50 = arith.constant dense<0.000000e+00> : vector<16xf32>
    %174 = vector.multi_reduction <add>, %171, %cst_50 [1] : vector<16x32xf32> to vector<16xf32>
    %175 = vector.shape_cast %174 : vector<16xf32> to vector<16x1xf32>
    %cst_51 = arith.constant 3.200000e+01 : f32
    %176 = vector.broadcast %cst_51 : f32 to vector<16x1xf32>
    %177 = arith.divf %175, %176 : vector<16x1xf32>
    %178 = vector.broadcast %177 : vector<16x1xf32> to vector<16x32xf32>
    %179 = arith.subf %171, %178 : vector<16x32xf32>
    %180 = arith.mulf %179, %179 : vector<16x32xf32>
    %cst_52 = arith.constant dense<0.000000e+00> : vector<16xf32>
    %181 = vector.multi_reduction <add>, %180, %cst_52 [1] : vector<16x32xf32> to vector<16xf32>
    %182 = vector.shape_cast %181 : vector<16xf32> to vector<16x1xf32>
    %cst_53 = arith.constant 3.200000e+01 : f32
    %183 = vector.broadcast %cst_53 : f32 to vector<16x1xf32>
    %184 = arith.divf %182, %183 : vector<16x1xf32>
    %185 = vector.broadcast %177 : vector<16x1xf32> to vector<16x32xf32>
    %186 = arith.subf %171, %185 : vector<16x32xf32>
    %cst_54 = arith.constant 9.99999974E-6 : f32
    %187 = vector.broadcast %cst_54 : f32 to vector<16x1xf32>
    %188 = arith.addf %184, %187 : vector<16x1xf32>
    %189 = math.rsqrt %188 : vector<16x1xf32>
    %190 = vector.broadcast %189 : vector<16x1xf32> to vector<16x32xf32>
    %191 = arith.mulf %186, %190 : vector<16x32xf32>
    %192 = vector.broadcast %172 : vector<1x32xf32> to vector<16x32xf32>
    %193 = arith.mulf %191, %192 : vector<16x32xf32>
    %194 = vector.broadcast %173 : vector<1x32xf32> to vector<16x32xf32>
    %195 = arith.addf %193, %194 : vector<16x32xf32>
    %196 = arith.truncf %195 : vector<16x32xf32> to vector<16x32xbf16>
    %c0_55 = arith.constant 0 : index
    %c128 = arith.constant 128 : index
    %197 = vector.load %arg4[%c0_55, %c128] : memref<32x320xbf16, #tpu.memory_space<vmem>>, vector<32x32xbf16>
    %cst_56 = arith.constant dense<0.000000e+00> : vector<16x32xf32>
    %198 = tpu.matmul %196, %197, %cst_56 {dimension_numbers = #tpu.dot_dimension_numbers<[1], [0], [0], [1], [0, 0, 1, 1], [], []>} : vector<16x32xbf16>, vector<32x32xbf16>, vector<16x32xf32> -> vector<16x32xf32>
    %c4 = arith.constant 4 : index
    %c0_57 = arith.constant 0 : index
    %199 = vector.load %arg6[%c4, %c0_57] : memref<16x128xf32, #tpu.memory_space<vmem>>, vector<1x32xf32>
    %200 = vector.broadcast %199 : vector<1x32xf32> to vector<16x32xf32>
    %201 = arith.addf %198, %200 : vector<16x32xf32>
    %202 = vector.extract_strided_slice %7 {offsets = [0, 0], sizes = [16, 32], strides = [1, 1]} : vector<16x64xf32> to vector<16x32xf32>
    %203 = vector.extract_strided_slice %7 {offsets = [0, 32], sizes = [16, 32], strides = [1, 1]} : vector<16x64xf32> to vector<16x32xf32>
    %c0_58 = arith.constant 0 : index
    %c0_59 = arith.constant 0 : index
    %c0_60 = arith.constant 0 : index
    %204 = vector.load %arg3[%c0_58, %c0_59, %c0_60] : memref<2x8x8xf32, #tpu.memory_space<vmem>>, vector<2x8x8xf32>
    %205 = arith.truncf %201 : vector<16x32xf32> to vector<16x32xbf16>
    %206 = arith.truncf %202 : vector<16x32xf32> to vector<16x32xbf16>
    %207 = arith.truncf %203 : vector<16x32xf32> to vector<16x32xbf16>
    %208 = vector.extract_strided_slice %205 {offsets = [0, 0], sizes = [8, 32], strides = [1, 1]} : vector<16x32xbf16> to vector<8x32xbf16>
    %209 = vector.extract_strided_slice %206 {offsets = [0, 0], sizes = [8, 32], strides = [1, 1]} : vector<16x32xbf16> to vector<8x32xbf16>
    %210 = vector.extract_strided_slice %207 {offsets = [0, 0], sizes = [8, 32], strides = [1, 1]} : vector<16x32xbf16> to vector<8x32xbf16>
    %211 = vector.extract_strided_slice %204 {offsets = [0, 0, 0], sizes = [1, 8, 8], strides = [1, 1, 1]} : vector<2x8x8xf32> to vector<1x8x8xf32>
    %212 = vector.shape_cast %211 : vector<1x8x8xf32> to vector<8x8xf32>
    %213 = vector.extract_strided_slice %208 {offsets = [0, 0], sizes = [8, 8], strides = [1, 1]} : vector<8x32xbf16> to vector<8x8xbf16>
    %214 = vector.extract_strided_slice %209 {offsets = [0, 0], sizes = [8, 8], strides = [1, 1]} : vector<8x32xbf16> to vector<8x8xbf16>
    %cst_61 = arith.constant dense<0.000000e+00> : vector<8x8xf32>
    %215 = tpu.matmul %213, %214, %cst_61 {dimension_numbers = #tpu.dot_dimension_numbers<[1], [1], [0], [0], [0, 0, 1, 0], [], []>} : vector<8x8xbf16>, vector<8x8xbf16>, vector<8x8xf32> -> vector<8x8xf32>
    %216 = arith.addf %215, %212 : vector<8x8xf32>
    %cst_62 = arith.constant dense<0xFF800000> : vector<8xf32>
    %217 = vector.multi_reduction <maximumf>, %216, %cst_62 [1] : vector<8x8xf32> to vector<8xf32>
    %218 = vector.shape_cast %217 : vector<8xf32> to vector<8x1xf32>
    %219 = vector.broadcast %218 : vector<8x1xf32> to vector<8x8xf32>
    %220 = arith.subf %216, %219 : vector<8x8xf32>
    %221 = math.exp %220 : vector<8x8xf32>
    %cst_63 = arith.constant dense<0.000000e+00> : vector<8xf32>
    %222 = vector.multi_reduction <add>, %221, %cst_63 [1] : vector<8x8xf32> to vector<8xf32>
    %223 = vector.shape_cast %222 : vector<8xf32> to vector<8x1xf32>
    %224 = vector.broadcast %223 : vector<8x1xf32> to vector<8x8xf32>
    %225 = arith.divf %221, %224 : vector<8x8xf32>
    %226 = arith.truncf %225 : vector<8x8xf32> to vector<8x8xbf16>
    %227 = vector.extract_strided_slice %210 {offsets = [0, 0], sizes = [8, 8], strides = [1, 1]} : vector<8x32xbf16> to vector<8x8xbf16>
    %cst_64 = arith.constant dense<0.000000e+00> : vector<8x8xf32>
    %228 = tpu.matmul %226, %227, %cst_64 {dimension_numbers = #tpu.dot_dimension_numbers<[1], [0], [0], [1], [0, 0, 1, 1], [], []>} : vector<8x8xbf16>, vector<8x8xbf16>, vector<8x8xf32> -> vector<8x8xf32>
    %229 = vector.extract_strided_slice %208 {offsets = [0, 8], sizes = [8, 8], strides = [1, 1]} : vector<8x32xbf16> to vector<8x8xbf16>
    %230 = vector.extract_strided_slice %209 {offsets = [0, 8], sizes = [8, 8], strides = [1, 1]} : vector<8x32xbf16> to vector<8x8xbf16>
    %cst_65 = arith.constant dense<0.000000e+00> : vector<8x8xf32>
    %231 = tpu.matmul %229, %230, %cst_65 {dimension_numbers = #tpu.dot_dimension_numbers<[1], [1], [0], [0], [0, 0, 1, 0], [], []>} : vector<8x8xbf16>, vector<8x8xbf16>, vector<8x8xf32> -> vector<8x8xf32>
    %232 = arith.addf %231, %212 : vector<8x8xf32>
    %cst_66 = arith.constant dense<0xFF800000> : vector<8xf32>
    %233 = vector.multi_reduction <maximumf>, %232, %cst_66 [1] : vector<8x8xf32> to vector<8xf32>
    %234 = vector.shape_cast %233 : vector<8xf32> to vector<8x1xf32>
    %235 = vector.broadcast %234 : vector<8x1xf32> to vector<8x8xf32>
    %236 = arith.subf %232, %235 : vector<8x8xf32>
    %237 = math.exp %236 : vector<8x8xf32>
    %cst_67 = arith.constant dense<0.000000e+00> : vector<8xf32>
    %238 = vector.multi_reduction <add>, %237, %cst_67 [1] : vector<8x8xf32> to vector<8xf32>
    %239 = vector.shape_cast %238 : vector<8xf32> to vector<8x1xf32>
    %240 = vector.broadcast %239 : vector<8x1xf32> to vector<8x8xf32>
    %241 = arith.divf %237, %240 : vector<8x8xf32>
    %242 = arith.truncf %241 : vector<8x8xf32> to vector<8x8xbf16>
    %243 = vector.extract_strided_slice %210 {offsets = [0, 8], sizes = [8, 8], strides = [1, 1]} : vector<8x32xbf16> to vector<8x8xbf16>
    %cst_68 = arith.constant dense<0.000000e+00> : vector<8x8xf32>
    %244 = tpu.matmul %242, %243, %cst_68 {dimension_numbers = #tpu.dot_dimension_numbers<[1], [0], [0], [1], [0, 0, 1, 1], [], []>} : vector<8x8xbf16>, vector<8x8xbf16>, vector<8x8xf32> -> vector<8x8xf32>
    %245 = vector.extract_strided_slice %208 {offsets = [0, 16], sizes = [8, 8], strides = [1, 1]} : vector<8x32xbf16> to vector<8x8xbf16>
    %246 = vector.extract_strided_slice %209 {offsets = [0, 16], sizes = [8, 8], strides = [1, 1]} : vector<8x32xbf16> to vector<8x8xbf16>
    %cst_69 = arith.constant dense<0.000000e+00> : vector<8x8xf32>
    %247 = tpu.matmul %245, %246, %cst_69 {dimension_numbers = #tpu.dot_dimension_numbers<[1], [1], [0], [0], [0, 0, 1, 0], [], []>} : vector<8x8xbf16>, vector<8x8xbf16>, vector<8x8xf32> -> vector<8x8xf32>
    %248 = arith.addf %247, %212 : vector<8x8xf32>
    %cst_70 = arith.constant dense<0xFF800000> : vector<8xf32>
    %249 = vector.multi_reduction <maximumf>, %248, %cst_70 [1] : vector<8x8xf32> to vector<8xf32>
    %250 = vector.shape_cast %249 : vector<8xf32> to vector<8x1xf32>
    %251 = vector.broadcast %250 : vector<8x1xf32> to vector<8x8xf32>
    %252 = arith.subf %248, %251 : vector<8x8xf32>
    %253 = math.exp %252 : vector<8x8xf32>
    %cst_71 = arith.constant dense<0.000000e+00> : vector<8xf32>
    %254 = vector.multi_reduction <add>, %253, %cst_71 [1] : vector<8x8xf32> to vector<8xf32>
    %255 = vector.shape_cast %254 : vector<8xf32> to vector<8x1xf32>
    %256 = vector.broadcast %255 : vector<8x1xf32> to vector<8x8xf32>
    %257 = arith.divf %253, %256 : vector<8x8xf32>
    %258 = arith.truncf %257 : vector<8x8xf32> to vector<8x8xbf16>
    %259 = vector.extract_strided_slice %210 {offsets = [0, 16], sizes = [8, 8], strides = [1, 1]} : vector<8x32xbf16> to vector<8x8xbf16>
    %cst_72 = arith.constant dense<0.000000e+00> : vector<8x8xf32>
    %260 = tpu.matmul %258, %259, %cst_72 {dimension_numbers = #tpu.dot_dimension_numbers<[1], [0], [0], [1], [0, 0, 1, 1], [], []>} : vector<8x8xbf16>, vector<8x8xbf16>, vector<8x8xf32> -> vector<8x8xf32>
    %261 = vector.extract_strided_slice %208 {offsets = [0, 24], sizes = [8, 8], strides = [1, 1]} : vector<8x32xbf16> to vector<8x8xbf16>
    %262 = vector.extract_strided_slice %209 {offsets = [0, 24], sizes = [8, 8], strides = [1, 1]} : vector<8x32xbf16> to vector<8x8xbf16>
    %cst_73 = arith.constant dense<0.000000e+00> : vector<8x8xf32>
    %263 = tpu.matmul %261, %262, %cst_73 {dimension_numbers = #tpu.dot_dimension_numbers<[1], [1], [0], [0], [0, 0, 1, 0], [], []>} : vector<8x8xbf16>, vector<8x8xbf16>, vector<8x8xf32> -> vector<8x8xf32>
    %264 = arith.addf %263, %212 : vector<8x8xf32>
    %cst_74 = arith.constant dense<0xFF800000> : vector<8xf32>
    %265 = vector.multi_reduction <maximumf>, %264, %cst_74 [1] : vector<8x8xf32> to vector<8xf32>
    %266 = vector.shape_cast %265 : vector<8xf32> to vector<8x1xf32>
    %267 = vector.broadcast %266 : vector<8x1xf32> to vector<8x8xf32>
    %268 = arith.subf %264, %267 : vector<8x8xf32>
    %269 = math.exp %268 : vector<8x8xf32>
    %cst_75 = arith.constant dense<0.000000e+00> : vector<8xf32>
    %270 = vector.multi_reduction <add>, %269, %cst_75 [1] : vector<8x8xf32> to vector<8xf32>
    %271 = vector.shape_cast %270 : vector<8xf32> to vector<8x1xf32>
    %272 = vector.broadcast %271 : vector<8x1xf32> to vector<8x8xf32>
    %273 = arith.divf %269, %272 : vector<8x8xf32>
    %274 = arith.truncf %273 : vector<8x8xf32> to vector<8x8xbf16>
    %275 = vector.extract_strided_slice %210 {offsets = [0, 24], sizes = [8, 8], strides = [1, 1]} : vector<8x32xbf16> to vector<8x8xbf16>
    %cst_76 = arith.constant dense<0.000000e+00> : vector<8x8xf32>
    %276 = tpu.matmul %274, %275, %cst_76 {dimension_numbers = #tpu.dot_dimension_numbers<[1], [0], [0], [1], [0, 0, 1, 1], [], []>} : vector<8x8xbf16>, vector<8x8xbf16>, vector<8x8xf32> -> vector<8x8xf32>
    %277 = tpu.concatenate %225, %241, %257, %273 in 1 : vector<8x8xf32>, vector<8x8xf32>, vector<8x8xf32>, vector<8x8xf32> -> vector<8x32xf32>
    %278 = tpu.concatenate %228, %244, %260, %276 in 1 : vector<8x8xf32>, vector<8x8xf32>, vector<8x8xf32>, vector<8x8xf32> -> vector<8x32xf32>
    %279 = vector.extract_strided_slice %205 {offsets = [8, 0], sizes = [8, 32], strides = [1, 1]} : vector<16x32xbf16> to vector<8x32xbf16>
    %280 = vector.extract_strided_slice %206 {offsets = [8, 0], sizes = [8, 32], strides = [1, 1]} : vector<16x32xbf16> to vector<8x32xbf16>
    %281 = vector.extract_strided_slice %207 {offsets = [8, 0], sizes = [8, 32], strides = [1, 1]} : vector<16x32xbf16> to vector<8x32xbf16>
    %282 = vector.extract_strided_slice %204 {offsets = [1, 0, 0], sizes = [1, 8, 8], strides = [1, 1, 1]} : vector<2x8x8xf32> to vector<1x8x8xf32>
    %283 = vector.shape_cast %282 : vector<1x8x8xf32> to vector<8x8xf32>
    %284 = vector.extract_strided_slice %279 {offsets = [0, 0], sizes = [8, 8], strides = [1, 1]} : vector<8x32xbf16> to vector<8x8xbf16>
    %285 = vector.extract_strided_slice %280 {offsets = [0, 0], sizes = [8, 8], strides = [1, 1]} : vector<8x32xbf16> to vector<8x8xbf16>
    %cst_77 = arith.constant dense<0.000000e+00> : vector<8x8xf32>
    %286 = tpu.matmul %284, %285, %cst_77 {dimension_numbers = #tpu.dot_dimension_numbers<[1], [1], [0], [0], [0, 0, 1, 0], [], []>} : vector<8x8xbf16>, vector<8x8xbf16>, vector<8x8xf32> -> vector<8x8xf32>
    %287 = arith.addf %286, %283 : vector<8x8xf32>
    %cst_78 = arith.constant dense<0xFF800000> : vector<8xf32>
    %288 = vector.multi_reduction <maximumf>, %287, %cst_78 [1] : vector<8x8xf32> to vector<8xf32>
    %289 = vector.shape_cast %288 : vector<8xf32> to vector<8x1xf32>
    %290 = vector.broadcast %289 : vector<8x1xf32> to vector<8x8xf32>
    %291 = arith.subf %287, %290 : vector<8x8xf32>
    %292 = math.exp %291 : vector<8x8xf32>
    %cst_79 = arith.constant dense<0.000000e+00> : vector<8xf32>
    %293 = vector.multi_reduction <add>, %292, %cst_79 [1] : vector<8x8xf32> to vector<8xf32>
    %294 = vector.shape_cast %293 : vector<8xf32> to vector<8x1xf32>
    %295 = vector.broadcast %294 : vector<8x1xf32> to vector<8x8xf32>
    %296 = arith.divf %292, %295 : vector<8x8xf32>
    %297 = arith.truncf %296 : vector<8x8xf32> to vector<8x8xbf16>
    %298 = vector.extract_strided_slice %281 {offsets = [0, 0], sizes = [8, 8], strides = [1, 1]} : vector<8x32xbf16> to vector<8x8xbf16>
    %cst_80 = arith.constant dense<0.000000e+00> : vector<8x8xf32>
    %299 = tpu.matmul %297, %298, %cst_80 {dimension_numbers = #tpu.dot_dimension_numbers<[1], [0], [0], [1], [0, 0, 1, 1], [], []>} : vector<8x8xbf16>, vector<8x8xbf16>, vector<8x8xf32> -> vector<8x8xf32>
    %300 = vector.extract_strided_slice %279 {offsets = [0, 8], sizes = [8, 8], strides = [1, 1]} : vector<8x32xbf16> to vector<8x8xbf16>
    %301 = vector.extract_strided_slice %280 {offsets = [0, 8], sizes = [8, 8], strides = [1, 1]} : vector<8x32xbf16> to vector<8x8xbf16>
    %cst_81 = arith.constant dense<0.000000e+00> : vector<8x8xf32>
    %302 = tpu.matmul %300, %301, %cst_81 {dimension_numbers = #tpu.dot_dimension_numbers<[1], [1], [0], [0], [0, 0, 1, 0], [], []>} : vector<8x8xbf16>, vector<8x8xbf16>, vector<8x8xf32> -> vector<8x8xf32>
    %303 = arith.addf %302, %283 : vector<8x8xf32>
    %cst_82 = arith.constant dense<0xFF800000> : vector<8xf32>
    %304 = vector.multi_reduction <maximumf>, %303, %cst_82 [1] : vector<8x8xf32> to vector<8xf32>
    %305 = vector.shape_cast %304 : vector<8xf32> to vector<8x1xf32>
    %306 = vector.broadcast %305 : vector<8x1xf32> to vector<8x8xf32>
    %307 = arith.subf %303, %306 : vector<8x8xf32>
    %308 = math.exp %307 : vector<8x8xf32>
    %cst_83 = arith.constant dense<0.000000e+00> : vector<8xf32>
    %309 = vector.multi_reduction <add>, %308, %cst_83 [1] : vector<8x8xf32> to vector<8xf32>
    %310 = vector.shape_cast %309 : vector<8xf32> to vector<8x1xf32>
    %311 = vector.broadcast %310 : vector<8x1xf32> to vector<8x8xf32>
    %312 = arith.divf %308, %311 : vector<8x8xf32>
    %313 = arith.truncf %312 : vector<8x8xf32> to vector<8x8xbf16>
    %314 = vector.extract_strided_slice %281 {offsets = [0, 8], sizes = [8, 8], strides = [1, 1]} : vector<8x32xbf16> to vector<8x8xbf16>
    %cst_84 = arith.constant dense<0.000000e+00> : vector<8x8xf32>
    %315 = tpu.matmul %313, %314, %cst_84 {dimension_numbers = #tpu.dot_dimension_numbers<[1], [0], [0], [1], [0, 0, 1, 1], [], []>} : vector<8x8xbf16>, vector<8x8xbf16>, vector<8x8xf32> -> vector<8x8xf32>
    %316 = vector.extract_strided_slice %279 {offsets = [0, 16], sizes = [8, 8], strides = [1, 1]} : vector<8x32xbf16> to vector<8x8xbf16>
    %317 = vector.extract_strided_slice %280 {offsets = [0, 16], sizes = [8, 8], strides = [1, 1]} : vector<8x32xbf16> to vector<8x8xbf16>
    %cst_85 = arith.constant dense<0.000000e+00> : vector<8x8xf32>
    %318 = tpu.matmul %316, %317, %cst_85 {dimension_numbers = #tpu.dot_dimension_numbers<[1], [1], [0], [0], [0, 0, 1, 0], [], []>} : vector<8x8xbf16>, vector<8x8xbf16>, vector<8x8xf32> -> vector<8x8xf32>
    %319 = arith.addf %318, %283 : vector<8x8xf32>
    %cst_86 = arith.constant dense<0xFF800000> : vector<8xf32>
    %320 = vector.multi_reduction <maximumf>, %319, %cst_86 [1] : vector<8x8xf32> to vector<8xf32>
    %321 = vector.shape_cast %320 : vector<8xf32> to vector<8x1xf32>
    %322 = vector.broadcast %321 : vector<8x1xf32> to vector<8x8xf32>
    %323 = arith.subf %319, %322 : vector<8x8xf32>
    %324 = math.exp %323 : vector<8x8xf32>
    %cst_87 = arith.constant dense<0.000000e+00> : vector<8xf32>
    %325 = vector.multi_reduction <add>, %324, %cst_87 [1] : vector<8x8xf32> to vector<8xf32>
    %326 = vector.shape_cast %325 : vector<8xf32> to vector<8x1xf32>
    %327 = vector.broadcast %326 : vector<8x1xf32> to vector<8x8xf32>
    %328 = arith.divf %324, %327 : vector<8x8xf32>
    %329 = arith.truncf %328 : vector<8x8xf32> to vector<8x8xbf16>
    %330 = vector.extract_strided_slice %281 {offsets = [0, 16], sizes = [8, 8], strides = [1, 1]} : vector<8x32xbf16> to vector<8x8xbf16>
    %cst_88 = arith.constant dense<0.000000e+00> : vector<8x8xf32>
    %331 = tpu.matmul %329, %330, %cst_88 {dimension_numbers = #tpu.dot_dimension_numbers<[1], [0], [0], [1], [0, 0, 1, 1], [], []>} : vector<8x8xbf16>, vector<8x8xbf16>, vector<8x8xf32> -> vector<8x8xf32>
    %332 = vector.extract_strided_slice %279 {offsets = [0, 24], sizes = [8, 8], strides = [1, 1]} : vector<8x32xbf16> to vector<8x8xbf16>
    %333 = vector.extract_strided_slice %280 {offsets = [0, 24], sizes = [8, 8], strides = [1, 1]} : vector<8x32xbf16> to vector<8x8xbf16>
    %cst_89 = arith.constant dense<0.000000e+00> : vector<8x8xf32>
    %334 = tpu.matmul %332, %333, %cst_89 {dimension_numbers = #tpu.dot_dimension_numbers<[1], [1], [0], [0], [0, 0, 1, 0], [], []>} : vector<8x8xbf16>, vector<8x8xbf16>, vector<8x8xf32> -> vector<8x8xf32>
    %335 = arith.addf %334, %283 : vector<8x8xf32>
    %cst_90 = arith.constant dense<0xFF800000> : vector<8xf32>
    %336 = vector.multi_reduction <maximumf>, %335, %cst_90 [1] : vector<8x8xf32> to vector<8xf32>
    %337 = vector.shape_cast %336 : vector<8xf32> to vector<8x1xf32>
    %338 = vector.broadcast %337 : vector<8x1xf32> to vector<8x8xf32>
    %339 = arith.subf %335, %338 : vector<8x8xf32>
    %340 = math.exp %339 : vector<8x8xf32>
    %cst_91 = arith.constant dense<0.000000e+00> : vector<8xf32>
    %341 = vector.multi_reduction <add>, %340, %cst_91 [1] : vector<8x8xf32> to vector<8xf32>
    %342 = vector.shape_cast %341 : vector<8xf32> to vector<8x1xf32>
    %343 = vector.broadcast %342 : vector<8x1xf32> to vector<8x8xf32>
    %344 = arith.divf %340, %343 : vector<8x8xf32>
    %345 = arith.truncf %344 : vector<8x8xf32> to vector<8x8xbf16>
    %346 = vector.extract_strided_slice %281 {offsets = [0, 24], sizes = [8, 8], strides = [1, 1]} : vector<8x32xbf16> to vector<8x8xbf16>
    %cst_92 = arith.constant dense<0.000000e+00> : vector<8x8xf32>
    %347 = tpu.matmul %345, %346, %cst_92 {dimension_numbers = #tpu.dot_dimension_numbers<[1], [0], [0], [1], [0, 0, 1, 1], [], []>} : vector<8x8xbf16>, vector<8x8xbf16>, vector<8x8xf32> -> vector<8x8xf32>
    %348 = tpu.concatenate %296, %312, %328, %344 in 1 : vector<8x8xf32>, vector<8x8xf32>, vector<8x8xf32>, vector<8x8xf32> -> vector<8x32xf32>
    %349 = tpu.concatenate %299, %315, %331, %347 in 1 : vector<8x8xf32>, vector<8x8xf32>, vector<8x8xf32>, vector<8x8xf32> -> vector<8x32xf32>
    %350 = tpu.concatenate %278, %349 in 0 : vector<8x32xf32>, vector<8x32xf32> -> vector<16x32xf32>
    %351 = tpu.concatenate %277, %348 in 0 : vector<8x32xf32>, vector<8x32xf32> -> vector<16x32xf32>
    %352 = arith.truncf %350 : vector<16x32xf32> to vector<16x32xbf16>
    %c0_93 = arith.constant 0 : index
    %c224 = arith.constant 224 : index
    %353 = vector.load %arg4[%c0_93, %c224] : memref<32x320xbf16, #tpu.memory_space<vmem>>, vector<32x32xbf16>
    %cst_94 = arith.constant dense<0.000000e+00> : vector<16x32xf32>
    %354 = tpu.matmul %352, %353, %cst_94 {dimension_numbers = #tpu.dot_dimension_numbers<[1], [0], [0], [1], [0, 0, 1, 1], [], []>} : vector<16x32xbf16>, vector<32x32xbf16>, vector<16x32xf32> -> vector<16x32xf32>
    %c6 = arith.constant 6 : index
    %c0_95 = arith.constant 0 : index
    %355 = vector.load %arg6[%c6, %c0_95] : memref<16x128xf32, #tpu.memory_space<vmem>>, vector<1x32xf32>
    %356 = vector.broadcast %355 : vector<1x32xf32> to vector<16x32xf32>
    %357 = arith.addf %354, %356 : vector<16x32xf32>
    %358 = arith.addf %357, %195 : vector<16x32xf32>
    %c7 = arith.constant 7 : index
    %c0_96 = arith.constant 0 : index
    %359 = vector.load %arg6[%c7, %c0_96] : memref<16x128xf32, #tpu.memory_space<vmem>>, vector<1x32xf32>
    %c8 = arith.constant 8 : index
    %c0_97 = arith.constant 0 : index
    %360 = vector.load %arg6[%c8, %c0_97] : memref<16x128xf32, #tpu.memory_space<vmem>>, vector<1x32xf32>
    %cst_98 = arith.constant dense<0.000000e+00> : vector<16xf32>
    %361 = vector.multi_reduction <add>, %358, %cst_98 [1] : vector<16x32xf32> to vector<16xf32>
    %362 = vector.shape_cast %361 : vector<16xf32> to vector<16x1xf32>
    %cst_99 = arith.constant 3.200000e+01 : f32
    %363 = vector.broadcast %cst_99 : f32 to vector<16x1xf32>
    %364 = arith.divf %362, %363 : vector<16x1xf32>
    %365 = vector.broadcast %364 : vector<16x1xf32> to vector<16x32xf32>
    %366 = arith.subf %358, %365 : vector<16x32xf32>
    %367 = arith.mulf %366, %366 : vector<16x32xf32>
    %cst_100 = arith.constant dense<0.000000e+00> : vector<16xf32>
    %368 = vector.multi_reduction <add>, %367, %cst_100 [1] : vector<16x32xf32> to vector<16xf32>
    %369 = vector.shape_cast %368 : vector<16xf32> to vector<16x1xf32>
    %cst_101 = arith.constant 3.200000e+01 : f32
    %370 = vector.broadcast %cst_101 : f32 to vector<16x1xf32>
    %371 = arith.divf %369, %370 : vector<16x1xf32>
    %372 = vector.broadcast %364 : vector<16x1xf32> to vector<16x32xf32>
    %373 = arith.subf %358, %372 : vector<16x32xf32>
    %cst_102 = arith.constant 9.99999974E-6 : f32
    %374 = vector.broadcast %cst_102 : f32 to vector<16x1xf32>
    %375 = arith.addf %371, %374 : vector<16x1xf32>
    %376 = math.rsqrt %375 : vector<16x1xf32>
    %377 = vector.broadcast %376 : vector<16x1xf32> to vector<16x32xf32>
    %378 = arith.mulf %373, %377 : vector<16x32xf32>
    %379 = vector.broadcast %359 : vector<1x32xf32> to vector<16x32xf32>
    %380 = arith.mulf %378, %379 : vector<16x32xf32>
    %381 = vector.broadcast %360 : vector<1x32xf32> to vector<16x32xf32>
    %382 = arith.addf %380, %381 : vector<16x32xf32>
    %383 = arith.truncf %382 : vector<16x32xf32> to vector<16x32xbf16>
    %c0_103 = arith.constant 0 : index
    %c256 = arith.constant 256 : index
    %384 = vector.load %arg4[%c0_103, %c256] : memref<32x320xbf16, #tpu.memory_space<vmem>>, vector<32x64xbf16>
    %cst_104 = arith.constant dense<0.000000e+00> : vector<16x64xf32>
    %385 = tpu.matmul %383, %384, %cst_104 {dimension_numbers = #tpu.dot_dimension_numbers<[1], [0], [0], [1], [0, 0, 1, 1], [], []>} : vector<16x32xbf16>, vector<32x64xbf16>, vector<16x64xf32> -> vector<16x64xf32>
    %c9 = arith.constant 9 : index
    %c0_105 = arith.constant 0 : index
    %386 = vector.load %arg6[%c9, %c0_105] : memref<16x128xf32, #tpu.memory_space<vmem>>, vector<1x64xf32>
    %387 = vector.broadcast %386 : vector<1x64xf32> to vector<16x64xf32>
    %388 = arith.addf %385, %387 : vector<16x64xf32>
    %cst_106 = arith.constant 0.000000e+00 : f32
    %389 = vector.broadcast %cst_106 : f32 to vector<16x64xf32>
    %390 = arith.maximumf %388, %389 : vector<16x64xf32>
    %391 = arith.truncf %390 : vector<16x64xf32> to vector<16x64xbf16>
    %c0_107 = arith.constant 0 : index
    %c0_108 = arith.constant 0 : index
    %392 = vector.load %arg5[%c0_107, %c0_108] : memref<64x32xbf16, #tpu.memory_space<vmem>>, vector<64x32xbf16>
    %cst_109 = arith.constant dense<0.000000e+00> : vector<16x32xf32>
    %393 = tpu.matmul %391, %392, %cst_109 {dimension_numbers = #tpu.dot_dimension_numbers<[1], [0], [0], [1], [0, 0, 1, 1], [], []>} : vector<16x64xbf16>, vector<64x32xbf16>, vector<16x32xf32> -> vector<16x32xf32>
    %c10 = arith.constant 10 : index
    %c0_110 = arith.constant 0 : index
    %394 = vector.load %arg6[%c10, %c0_110] : memref<16x128xf32, #tpu.memory_space<vmem>>, vector<1x32xf32>
    %395 = vector.broadcast %394 : vector<1x32xf32> to vector<16x32xf32>
    %396 = arith.addf %393, %395 : vector<16x32xf32>
    %397 = arith.addf %396, %382 : vector<16x32xf32>
    %c11 = arith.constant 11 : index
    %c0_111 = arith.constant 0 : index
    %398 = vector.load %arg6[%c11, %c0_111] : memref<16x128xf32, #tpu.memory_space<vmem>>, vector<1x32xf32>
    %c12 = arith.constant 12 : index
    %c0_112 = arith.constant 0 : index
    %399 = vector.load %arg6[%c12, %c0_112] : memref<16x128xf32, #tpu.memory_space<vmem>>, vector<1x32xf32>
    %cst_113 = arith.constant dense<0.000000e+00> : vector<16xf32>
    %400 = vector.multi_reduction <add>, %397, %cst_113 [1] : vector<16x32xf32> to vector<16xf32>
    %401 = vector.shape_cast %400 : vector<16xf32> to vector<16x1xf32>
    %cst_114 = arith.constant 3.200000e+01 : f32
    %402 = vector.broadcast %cst_114 : f32 to vector<16x1xf32>
    %403 = arith.divf %401, %402 : vector<16x1xf32>
    %404 = vector.broadcast %403 : vector<16x1xf32> to vector<16x32xf32>
    %405 = arith.subf %397, %404 : vector<16x32xf32>
    %406 = arith.mulf %405, %405 : vector<16x32xf32>
    %cst_115 = arith.constant dense<0.000000e+00> : vector<16xf32>
    %407 = vector.multi_reduction <add>, %406, %cst_115 [1] : vector<16x32xf32> to vector<16xf32>
    %408 = vector.shape_cast %407 : vector<16xf32> to vector<16x1xf32>
    %cst_116 = arith.constant 3.200000e+01 : f32
    %409 = vector.broadcast %cst_116 : f32 to vector<16x1xf32>
    %410 = arith.divf %408, %409 : vector<16x1xf32>
    %411 = vector.broadcast %403 : vector<16x1xf32> to vector<16x32xf32>
    %412 = arith.subf %397, %411 : vector<16x32xf32>
    %cst_117 = arith.constant 9.99999974E-6 : f32
    %413 = vector.broadcast %cst_117 : f32 to vector<16x1xf32>
    %414 = arith.addf %410, %413 : vector<16x1xf32>
    %415 = math.rsqrt %414 : vector<16x1xf32>
    %416 = vector.broadcast %415 : vector<16x1xf32> to vector<16x32xf32>
    %417 = arith.mulf %412, %416 : vector<16x32xf32>
    %418 = vector.broadcast %398 : vector<1x32xf32> to vector<16x32xf32>
    %419 = arith.mulf %417, %418 : vector<16x32xf32>
    %420 = vector.broadcast %399 : vector<1x32xf32> to vector<16x32xf32>
    %421 = arith.addf %419, %420 : vector<16x32xf32>
    %cst_118 = arith.constant 0.000000e+00 : f32
    %422 = vector.broadcast %cst_118 : f32 to vector<16x32xf32>
    %423 = tpu.concatenate %421, %164, %351, %422 in 1 : vector<16x32xf32>, vector<16x32xf32>, vector<16x32xf32>, vector<16x32xf32> -> vector<16x128xf32>
    %c0_119 = arith.constant 0 : index
    %c0_120 = arith.constant 0 : index
    %424 = vector.load %arg7[%c0_119, %c0_120] : memref<16x128xf32, #tpu.memory_space<vmem>>, vector<16x128xf32>
    tpu.vector_store %arg7[%c0_119, %c0_120], %423 {strides = array<i32>} : memref<16x128xf32, #tpu.memory_space<vmem>>, vector<16x128xf32>,
    return
  }
}

</mosaic_0001>

<bundles_post_ra>
// kernel: decoder_layer.1
= control target key start
LH: loop header
LB: loop body
LE: loop exit
PB: predicated region body
PF: predicated region fallthrough
CT: control target
= control target key end

     0   :  { %12 = vsyncpa [#allocation3], 0  ;;  %s3099_s24 = smov [#allocation2]   ;;  %s3809_s0 = inlined_call_operand.vmem [shape: f32[16,32], index: 0, kind: input, shape index: {}]   ;;  %s3810_s1 = inlined_call_operand.vmem [shape: f32[16,32], index: 1, kind: input, shape index: {}]   ;;  %s3811_s2 = inlined_call_operand.vmem [shape: f32[2,8,8], index: 2, kind: input, shape index: {}]   ;;  %s3812_s3 = inlined_call_operand.vmem [shape: f32[2,8,8], index: 3, kind: input, shape index: {}]   ;;  %s3813_s4 = inlined_call_operand.vmem [shape: bf16[32,320], index: 4, kind: input, shape index: {}]   ;;  %s3814_s5 = inlined_call_operand.vmem [shape: bf16[64,32], index: 5, kind: input, shape index: {}]   ;;  %s3815_s6 = inlined_call_operand.hbm [shape: f32[16,128], index: 6, kind: input, shape index: {}]   ;;  %s3816_s7 = inlined_call_operand.vmem [shape: f32[16,128], index: 7, kind: output, shape index: {}]  }
   0x1   :  { %s30_s25 = sshll.u32 %s3099_s24, 4  ;;  %s31_s25 = int_to_ptr.vmem [resolvable:$true] %s30_s25 }
   0x2   :  { %s3085_s26 = scalar_lea.vmem %s31_s25, 256  ;;  %p3090_p1 = scmp.lt.s32.totalorder %s31_s25, %s31_s25 }
   0x3   :  { %p3086_p0 = scmp.ne.s32.totalorder %s31_s25, %s3085_s26  ;;  %p3091_p2 = scmp.lt.s32.totalorder %s3085_s26, %s3085_s26 }
   0x5   :  { %p3092_p3 = por %p3091_p2, %p3090_p1 }
   0x7   :  { %p3093_p4 = pnand %p3092_p3, %p3086_p0 }
   0x9   :  { %3096 = shalt.err (!%p3093_p4)
}
   0xa   :  { %s3100_s27 = smov 128   ;;  %s3101_s28 = smov 8  }
   0xb   :  { %36 = dma.hbm_to_vmem [thread:$0]  %s3815_s6, 256, %s31_s25, [#allocation3], %s3100_s27, %s3100_s27, %s3101_s28  }
   0xc   :  { %3097 = dma.done.wait [#allocation3], 256  }
   0xd   :  { %3098 = vsyncadd [#allocation3], 4294967040  ;;  %v3102_v0 = vmov 0.0   ;;  %vm3103_vm0 = vmmov 0   ;;  %v3171_v1 = vld [vmem:[%s3813_s4 + $0x1c] ss:$12 sps:$4 sm:$0xff]  }
   0xe   :  { %2688 = vmatprep.subr.bf16.mxu1 %v3102_v0  ;;  %2692 = vmatprep.mubr.msk.bf16.mxu1 %vm3103_vm0, %v3102_v0  ;;  %s3104_s6 = smov 96   ;;  %v3178_v2 = vld [vmem:[%s3813_s4 + $0x4] ss:$12 sps:$4 sm:$0xff]   ;;  %v44_v5 = vld [vmem:[%s3810_s1 + $0x8] sm:$0xff]  ;;  %vm71_vm1 = vcmask 261120   ;;  %s3106_s23 = smov 112  }
   0xf   :  { %2704 = vmatprep.subr.bf16.mxu0 %v3102_v0  ;;  %2706 = vmatprep.mubr.msk.bf16.mxu0 %vm3103_vm0, %v3102_v0  ;;  %v43_v4 = vld [vmem:[%s3810_s1] sm:$0xff]  ;;  %v3212_v11 = vld [vmem:[%s3809_s0 + $0x8] sm:$0xff]  ;;  %s3107_s24 = smov 88   ;;  %s3108_s25 = smov 104   ;;  %vm188_vm2 = vcmask 64512   ;;  %vm252_vm3 = vcmask 1043456  }
  0x10   :  { %67 = vrot.lane.b32.xlu0 %v3171_v1, %s3104_s6  ;;  %v45_v7 = vpack.c.bf16 %v44_v5, %v43_v4  ;;  %v3192_v8 = vld [vmem:[%s3813_s4 + $0x18] ss:$12 sps:$4 sm:$0xff]   ;;  %v3200_v9 = vld [vmem:[%s3813_s4] ss:$12 sps:$4 sm:$0xff]   ;;  %s3109_s26 = smov 80   ;;  %s3110_s27 = smov 72  }
  0x11   :  { %v3207_v10 = vld [vmem:[%s3809_s0] sm:$0xff]  ;;  %s3105_s0 = smov 120   ;;  %s3112_s10 = smov 64   ;;  %vm639_vm4 = vcmask 130048   ;;  %vm641_vm5 = vcmask 195584   ;;  %vm2422_vm6 = vcmask 523264  }
  0x12   :  { %v116_v12 = vpack.c.bf16 %v3212_v11, %v3207_v10  ;;  %v2539_v14 = vld [vmem:[#allocation2 + $0x5] ss:$0 sm:$0xff]  ;;  %v2543_v22 = vld [vmem:[#allocation2] ss:$0 sm:$0xff]  ;;  %s3113_s11 = smov 48   ;;  %s3114_s12 = smov 40  }
  0x13   :  { %v182_v52 = vld [vmem:[%s3811_s2] sm:$0xff]  ;;  %s3115_s13 = smov 32   ;;  %s3116_s14 = smov 16   ;;  %vm2529_vm7 = vcmask 785408  }
  0x14   :  { %65 = vrot.lane.b32.xlu0 %v3178_v2, %s3104_s6  ;;  %s3117_s15 = smov 24  }
  0x82   :  { %v68_v3 = vpop.permute.xlu0 %67 }
  0x83   :  { %2689 = vmatpush3.bf16.msra.mxu1 %v68_v3 }
  0x84   :  { %2690 = vmatprep.subr.bf16.mxu1 %v3102_v0 }
  0x86   :  { %v66_v6 = vpop.permute.xlu0 %65 }
  0x87   :  { %2691 = vmatpush3.bf16.msra.mxu1 %v66_v6 }
  0x88   :  { %2696 = vmatprep.subr.bf16.mxu1 %v3102_v0 }
  0x8a   :  { %2693 = vmatmul.mubr.msk.bf16.vlgmr.msra.gmra.mxu1 %vm71_vm1, %v45_v7 }
  0x8b   :  { %2697 = vmatpush3.bf16.msra.mxu1 %v3192_v8  ;;  %2700 = vmatprep.mubr.msk.bf16.mxu1 %vm3103_vm0, %v3102_v0 }
  0x8c   :  { %2698 = vmatprep.subr.bf16.mxu1 %v3102_v0 }
  0x8f   :  { %2699 = vmatpush3.bf16.msra.mxu1 %v3200_v9 }
  0x90   :  { %2710 = vmatprep.subr.bf16.mxu1 %v3102_v0 }
  0x92   :  { %2701 = vmatmul.mubr.msk.bf16.vlgmr.msra.gmra.mxu1 %vm71_vm1, %v116_v12 }
  0x93   :  { %2712 = vmatprep.mubr.msk.bf16.mxu1 %vm3103_vm0, %v3102_v0 }
 0x14a   :  { %v109_v13 = vpop.f32.mrf.mxu1 }
 0x14b   :  { %v110_v17 = vadd.f32 %v2539_v14, %v109_v13 }
 0x14c   :  { %v2694_v15 = vpop.f32.mrf.mxu1 }
 0x14e   :  { %v112_v16 = vpop.f32.mrf.mxu1 }
 0x14f   :  { %v113_v18 = vadd.f32 %v2539_v14, %v112_v16 }
 0x150   :  { %v2695_v19 = vpop.f32.mrf.mxu1 }
 0x151   :  { %v3222_v20 = vpack.c.bf16 %v113_v18, %v110_v17 }
 0x152   :  { %v175_v21 = vpop.f32.mrf.mxu1 }
 0x153   :  { %v176_v25 = vadd.f32 %v2543_v22, %v175_v21  ;;  %v183_v21 = vld [vmem:[%s3811_s2 + $0x8] sm:$0xff]  ;;  %s3111_s2 = smov 56  }
 0x154   :  { %v2702_v23 = vpop.f32.mrf.mxu1 }
 0x156   :  { %v178_v24 = vpop.f32.mrf.mxu1 }
 0x157   :  { %v179_v26 = vadd.f32 %v2543_v22, %v178_v24 }
 0x158   :  { %v2703_v27 = vpop.f32.mrf.mxu1 }
 0x159   :  { %v3224_v28 = vpack.c.bf16 %v179_v26, %v176_v25 }
 0x15b   :  { %296 = vrot.lane.b32.xlu0 %v3224_v28, %s3105_s0  ;;  %186 = vrot.lane.b32.xlu1 %v3224_v28, %s3104_s6  ;;  %v3239_v29 = vrot.slane %v3224_v28, 4 }
 0x15f   :  { %406 = vrot.lane.b32.xlu0 %v3224_v28, %s3106_s23  ;;  %298 = vrot.lane.b32.xlu1 %v3224_v28, %s3107_s24 }
 0x163   :  { %516 = vrot.lane.b32.xlu0 %v3224_v28, %s3108_s25  ;;  %408 = vrot.lane.b32.xlu1 %v3224_v28, %s3109_s26 }
 0x167   :  { %518 = vrot.lane.b32.xlu1 %v3224_v28, %s3110_s27  ;;  %769 = vrot.lane.b32.xlu0 %v3239_v29, %s3107_s24 }
 0x16b   :  { %879 = vrot.lane.b32.xlu0 %v3239_v29, %s3109_s26  ;;  %659 = vrot.lane.b32.xlu1 %v3239_v29, %s3104_s6 }
 0x16f   :  { %989 = vrot.lane.b32.xlu0 %v3239_v29, %s3110_s27  ;;  %767 = vrot.lane.b32.xlu1 %v3239_v29, %s3105_s0 }
 0x173   :  { %877 = vrot.lane.b32.xlu1 %v3239_v29, %s3106_s23 }
 0x177   :  { %987 = vrot.lane.b32.xlu1 %v3239_v29, %s3108_s25 }
 0x1cd   :  { %v187_v30 = vpop.permute.xlu1 %186  ;;  %v297_v35 = vpop.permute.xlu0 %296 }
 0x1ce   :  { %v193_v31 = vsel %vm188_vm2, %v187_v30, 0 }
 0x1cf   :  { %2705 = vmatpush3.bf16.xpose.msra.mxu0 %v193_v31 }
 0x1d0   :  { %2716 = vmatprep.subr.bf16.mxu0 %v3102_v0 }
 0x1d1   :  { %v299_v32 = vpop.permute.xlu1 %298  ;;  %v407_v38 = vpop.permute.xlu0 %406 }
 0x1d2   :  { %v304_v33 = vsel %vm188_vm2, %v299_v32, 0 }
 0x1d5   :  { %v409_v34 = vpop.permute.xlu1 %408  ;;  %v517_v41 = vpop.permute.xlu0 %516 }
 0x1d6   :  { %2707 = vmatmul.mubr.msk.bf16.vlgmr.msra.gmra.mxu0 %vm188_vm2, %v3224_v28  ;;  %v414_v36 = vsel %vm188_vm2, %v409_v34, 0 }
 0x1d7   :  { %2717 = vmatpush3.bf16.xpose.msra.mxu0 %v304_v33  ;;  %2718 = vmatprep.mubr.msk.bf16.mxu0 %vm3103_vm0, %v3102_v0 }
 0x1d8   :  { %2728 = vmatprep.subr.bf16.mxu0 %v3102_v0 }
 0x1d9   :  { %v519_v37 = vpop.permute.xlu1 %518  ;;  %v770_v43 = vpop.permute.xlu0 %769 }
 0x1da   :  { %v524_v39 = vsel %vm188_vm2, %v519_v37, 0  ;;  %v775_v44 = vsel %vm188_vm2, %v770_v43, 0 }
 0x1dd   :  { %v660_v40 = vpop.permute.xlu1 %659  ;;  %v880_v45 = vpop.permute.xlu0 %879 }
 0x1de   :  { %2719 = vmatmul.mubr.msk.bf16.vlgmr.msra.gmra.mxu0 %vm188_vm2, %v297_v35  ;;  %v665_v42 = vsel %vm188_vm2, %v660_v40, 0  ;;  %v885_v47 = vsel %vm188_vm2, %v880_v45, 0 }
 0x1df   :  { %2729 = vmatpush3.bf16.xpose.msra.mxu0 %v414_v36  ;;  %2730 = vmatprep.mubr.msk.bf16.mxu0 %vm3103_vm0, %v3102_v0 }
 0x1e0   :  { %2740 = vmatprep.subr.bf16.mxu0 %v3102_v0 }
 0x1e1   :  { %v768_v46 = vpop.permute.xlu1 %767  ;;  %v990_v48 = vpop.permute.xlu0 %989 }
 0x1e2   :  { %v995_v50 = vsel %vm188_vm2, %v990_v48, 0 }
 0x1e5   :  { %v878_v49 = vpop.permute.xlu1 %877 }
 0x1e6   :  { %2731 = vmatmul.mubr.msk.bf16.vlgmr.msra.gmra.mxu0 %vm188_vm2, %v407_v38 }
 0x1e7   :  { %2741 = vmatpush3.bf16.xpose.msra.mxu0 %v524_v39  ;;  %2742 = vmatprep.mubr.msk.bf16.mxu0 %vm3103_vm0, %v3102_v0 }
 0x1e8   :  { %2752 = vmatprep.subr.bf16.mxu0 %v3102_v0 }
 0x1e9   :  { %v988_v51 = vpop.permute.xlu1 %987 }
 0x1ee   :  { %2743 = vmatmul.mubr.msk.bf16.vlgmr.msra.gmra.mxu0 %vm188_vm2, %v517_v41 }
 0x1ef   :  { %2753 = vmatpush3.bf16.xpose.msra.mxu0 %v665_v42  ;;  %2754 = vmatprep.mubr.msk.bf16.mxu0 %vm3103_vm0, %v3102_v0 }
 0x1f0   :  { %2764 = vmatprep.subr.bf16.mxu0 %v3102_v0 }
 0x1f6   :  { %2755 = vmatmul.mubr.msk.bf16.vlgmr.msra.gmra.mxu0 %vm188_vm2, %v3239_v29 }
 0x1f7   :  { %2765 = vmatpush3.bf16.xpose.msra.mxu0 %v775_v44  ;;  %2766 = vmatprep.mubr.msk.bf16.mxu0 %vm3103_vm0, %v3102_v0 }
 0x1f8   :  { %2776 = vmatprep.subr.bf16.mxu0 %v3102_v0 }
 0x1fe   :  { %2767 = vmatmul.mubr.msk.bf16.vlgmr.msra.gmra.mxu0 %vm188_vm2, %v768_v46 }
 0x1ff   :  { %2777 = vmatpush3.bf16.xpose.msra.mxu0 %v885_v47  ;;  %2778 = vmatprep.mubr.msk.bf16.mxu0 %vm3103_vm0, %v3102_v0 }
 0x200   :  { %2788 = vmatprep.subr.bf16.mxu0 %v3102_v0 }
 0x206   :  { %2779 = vmatmul.mubr.msk.bf16.vlgmr.msra.gmra.mxu0 %vm188_vm2, %v878_v49 }
 0x207   :  { %2789 = vmatpush3.bf16.xpose.msra.mxu0 %v995_v50  ;;  %2790 = vmatprep.mubr.msk.bf16.mxu0 %vm3103_vm0, %v3102_v0 }
 0x208   :  { %2800 = vmatprep.subr.bf16.mxu0 %v3102_v0 }
 0x20e   :  { %2791 = vmatmul.mubr.msk.bf16.vlgmr.msra.gmra.mxu0 %vm188_vm2, %v988_v51 }
 0x20f   :  { %2804 = vmatprep.mubr.msk.bf16.mxu0 %vm3103_vm0, %v3102_v0 }
 0x296   :  { %v229_v53 = vpop.f32.mrf.mxu0 }
 0x297   :  { %v230_v54 = vadd.f32 %v229_v53, %v182_v52 }
 0x298   :  { %v2708_v55 = vpop.f32.mrf.mxu0 }
 0x299   :  { %v235_v56 = vsel %vm188_vm2, %v230_v54, -inf }
 0x29a   :  { %v232_v57 = vpop.f32.mrf.mxu0  ;;  %236 = vmax.xlane.f32.xlu0 %v235_v56 }
 0x29c   :  { %v2709_v58 = vpop.f32.mrf.mxu0 }
 0x29e   :  { %v340_v59 = vpop.f32.mrf.mxu0 }
 0x29f   :  { %v341_v60 = vadd.f32 %v340_v59, %v182_v52 }
 0x2a0   :  { %v2720_v61 = vpop.f32.mrf.mxu0 }
 0x2a1   :  { %v346_v62 = vsel %vm188_vm2, %v341_v60, -inf }
 0x2a2   :  { %v343_v63 = vpop.f32.mrf.mxu0  ;;  %347 = vmax.xlane.f32.xlu1 %v346_v62 }
 0x2a4   :  { %v2721_v3 = vpop.f32.mrf.mxu0 }
 0x2a6   :  { %v450_v4 = vpop.f32.mrf.mxu0 }
 0x2a7   :  { %v451_v5 = vadd.f32 %v450_v4, %v182_v52 }
 0x2a8   :  { %v2732_v6 = vpop.f32.mrf.mxu0 }
 0x2a9   :  { %v456_v7 = vsel %vm188_vm2, %v451_v5, -inf }
 0x2aa   :  { %v453_v12 = vpop.f32.mrf.mxu0  ;;  %457 = vmax.xlane.f32.xlu0 %v456_v7 }
 0x2ac   :  { %v2733_v13 = vpop.f32.mrf.mxu0 }
 0x2ae   :  { %v560_v14 = vpop.f32.mrf.mxu0 }
 0x2af   :  { %v3305_v15 = vadd.f32 %v560_v14, %v182_v52 }
 0x2b0   :  { %v2744_v16 = vpop.f32.mrf.mxu0 }
 0x2b1   :  { %v566_v17 = vsel %vm188_vm2, %v3305_v15, -inf }
 0x2b2   :  { %v563_v18 = vpop.f32.mrf.mxu0  ;;  %567 = vmax.xlane.f32.xlu0 %v566_v17 }
 0x2b4   :  { %v2745_v19 = vpop.f32.mrf.mxu0 }
 0x2b6   :  { %v701_v22 = vpop.f32.mrf.mxu0 }
 0x2b7   :  { %v3312_v23 = vadd.f32 %v701_v22, %v183_v21 }
 0x2b8   :  { %v2756_v24 = vpop.f32.mrf.mxu0 }
 0x2b9   :  { %v707_v25 = vsel %vm188_vm2, %v3312_v23, -inf }
 0x2ba   :  { %708 = vmax.xlane.f32.xlu1 %v707_v25  ;;  %v704_v26 = vpop.f32.mrf.mxu0 }
 0x2bc   :  { %v2757_v27 = vpop.f32.mrf.mxu0 }
 0x2be   :  { %v811_v30 = vpop.f32.mrf.mxu0 }
 0x2bf   :  { %v3316_v31 = vadd.f32 %v811_v30, %v183_v21 }
 0x2c0   :  { %v2768_v32 = vpop.f32.mrf.mxu0 }
 0x2c1   :  { %v817_v33 = vsel %vm188_vm2, %v3316_v31, -inf }
 0x2c2   :  { %818 = vmax.xlane.f32.xlu0 %v817_v33  ;;  %v814_v34 = vpop.f32.mrf.mxu0 }
 0x2c4   :  { %v2769_v35 = vpop.f32.mrf.mxu0 }
 0x2c6   :  { %v921_v36 = vpop.f32.mrf.mxu0 }
 0x2c7   :  { %v922_v37 = vadd.f32 %v921_v36, %v183_v21 }
 0x2c8   :  { %v2780_v38 = vpop.f32.mrf.mxu0 }
 0x2c9   :  { %v927_v39 = vsel %vm188_vm2, %v922_v37, -inf }
 0x2ca   :  { %928 = vmax.xlane.f32.xlu1 %v927_v39  ;;  %v924_v40 = vpop.f32.mrf.mxu0 }
 0x2cc   :  { %v2781_v41 = vpop.f32.mrf.mxu0 }
 0x2ce   :  { %v1031_v42 = vpop.f32.mrf.mxu0 }
 0x2cf   :  { %v3325_v46 = vadd.f32 %v1031_v42, %v183_v21 }
 0x2d0   :  { %v2792_v43 = vpop.f32.mrf.mxu0 }
 0x2d1   :  { %v1037_v47 = vsel %vm188_vm2, %v3325_v46, -inf }
 0x2d2   :  { %v1034_v44 = vpop.f32.mrf.mxu0 }
 0x2d4   :  { %v2793_v45 = vpop.f32.mrf.mxu0 }
 0x2d8   :  { %358 = vrot.lane.b32.xlu0 %v3224_v28, %s3111_s2 }
 0x2db   :  { %247 = vrot.lane.b32.xlu1 %v3224_v28, %s3112_s10 }
 0x2f7   :  { %1038 = vmax.xlane.f32.xlu0 %v1037_v47 }
 0x323   :  { %v237_v48 = vpop.xlane.xlu0 %236 }
 0x324   :  { %v238_v49 = vsub.f32 %v230_v54, %v237_v48 }
 0x326   :  { %v239_v50 = vmul.f32 1.442695, %v238_v49 }
 0x328   :  { %2999 = vpow2.f32 %v239_v50 }
 0x32b   :  { %v348_v51 = vpop.xlane.xlu1 %347 }
 0x32c   :  { %v349_v52 = vsub.f32 %v341_v60, %v348_v51 }
 0x32e   :  { %v350_v53 = vmul.f32 1.442695, %v349_v52 }
 0x330   :  { %3001 = vpow2.f32 %v350_v53 }
 0x333   :  { %v458_v55 = vpop.xlane.xlu0 %457 }
 0x334   :  { %v459_v56 = vsub.f32 %v451_v5, %v458_v55 }
 0x335   :  { %v3329_v57 = vpop.eup %2999 }
 0x336   :  { %v460_v58 = vmul.f32 1.442695, %v459_v56  ;;  %v241_v59 = vsel %vm188_vm2, %v3329_v57, 0.0 }
 0x337   :  { %242 = vadd.xlane.f32.xlu1 %v241_v59 }
 0x338   :  { %3003 = vpow2.f32 %v460_v58 }
 0x33b   :  { %v568_v5 = vpop.xlane.xlu0 %567 }
 0x33c   :  { %v569_v7 = vsub.f32 %v3305_v15, %v568_v5 }
 0x33d   :  { %v3333_v61 = vpop.eup %3001 }
 0x33e   :  { %v352_v54 = vsel %vm188_vm2, %v3333_v61, 0.0  ;;  %v570_v12 = vmul.f32 1.442695, %v569_v7 }
 0x33f   :  { %353 = vadd.xlane.f32.xlu0 %v352_v54 }
 0x340   :  { %3005 = vpow2.f32 %v570_v12 }
 0x343   :  { %v709_v63 = vpop.xlane.xlu1 %708 }
 0x344   :  { %v710_v13 = vsub.f32 %v3312_v23, %v709_v63 }
 0x345   :  { %v3337_v62 = vpop.eup %3003 }
 0x346   :  { %v462_v60 = vsel %vm188_vm2, %v3337_v62, 0.0  ;;  %v711_v17 = vmul.f32 1.442695, %v710_v13 }
 0x347   :  { %463 = vadd.xlane.f32.xlu1 %v462_v60 }
 0x348   :  { %3007 = vpow2.f32 %v711_v17 }
 0x34b   :  { %v819_v14 = vpop.xlane.xlu0 %818 }
 0x34c   :  { %v820_v16 = vsub.f32 %v3316_v31, %v819_v14 }
 0x34e   :  { %v821_v19 = vmul.f32 1.442695, %v820_v16 }
 0x34f   :  { %v359_v30 = vpop.permute.xlu0 %358 }
 0x350   :  { %3009 = vpow2.f32 %v821_v19  ;;  %v364_v42 = vsel %vm252_vm3, %v359_v30, 0 }
 0x353   :  { %v929_v3 = vpop.xlane.xlu1 %928 }
 0x354   :  { %v930_v18 = vsub.f32 %v922_v37, %v929_v3 }
 0x355   :  { %468 = vrot.lane.b32.xlu0 %v3224_v28, %s3113_s11 }
 0x356   :  { %v931_v21 = vmul.f32 1.442695, %v930_v18 }
 0x357   :  { %v248_v4 = vpop.permute.xlu1 %247 }
 0x358   :  { %v254_v6 = vsel %vm252_vm3, %v248_v4, 0  ;;  %578 = vrot.lane.b32.xlu1 %v3224_v28, %s3114_s12  ;;  %3011 = vpow2.f32 %v931_v21  ;;  %v3006_v28 = vpop.eup %3005 }
 0x359   :  { %2711 = vmatpush3.bf16.msra.mxu1 %v254_v6  ;;  %v572_v22 = vsel %vm188_vm2, %v3006_v28, 0.0  ;;  %v3351_v24 = vpop.eup %3007 }
 0x35a   :  { %2722 = vmatprep.subr.bf16.mxu1 %v3102_v0  ;;  %v713_v23 = vsel %vm188_vm2, %v3351_v24, 0.0 }
 0x35d   :  { %v3353_v15 = vpop.eup %3009 }
 0x35e   :  { %v823_v26 = vsel %vm188_vm2, %v3353_v15, 0.0 }
 0x365   :  { %v3357_v25 = vpop.eup %3011 }
 0x366   :  { %v933_v27 = vsel %vm188_vm2, %v3357_v25, 0.0 }
 0x374   :  { %573 = vadd.xlane.f32.xlu0 %v572_v22 }
 0x378   :  { %714 = vadd.xlane.f32.xlu0 %v713_v23 }
 0x37c   :  { %824 = vadd.xlane.f32.xlu1 %v823_v26  ;;  %934 = vadd.xlane.f32.xlu0 %v933_v27 }
 0x380   :  { %v1039_v31 = vpop.xlane.xlu0 %1038 }
 0x381   :  { %v1040_v32 = vsub.f32 %v3325_v46, %v1039_v31 }
 0x383   :  { %v1041_v33 = vmul.f32 1.442695, %v1040_v32 }
 0x385   :  { %3013 = vpow2.f32 %v1041_v33 }
 0x38d   :  { %829 = vrot.lane.b32.xlu1 %v3239_v29, %s3111_s2 }
 0x391   :  { %939 = vrot.lane.b32.xlu1 %v3239_v29, %s3113_s11 }
 0x392   :  { %v3368_v34 = vpop.eup %3013 }
 0x393   :  { %v1043_v35 = vsel %vm188_vm2, %v3368_v34, 0.0 }
 0x394   :  { %1044 = vadd.xlane.f32.xlu0 %v1043_v35 }
 0x395   :  { %1049 = vrot.lane.b32.xlu1 %v3239_v29, %s3114_s12 }
 0x399   :  { %1135 = vrot.lane.b32.xlu1 %v3192_v8, %s3115_s13 }
 0x3aa   :  { %719 = vrot.lane.b32.xlu0 %v3239_v29, %s3112_s10 }
 0x3c0   :  { %v243_v36 = vpop.xlane.xlu1 %242 }
 0x3c1   :  { %3015 = vrcp.f32 %v243_v36 }
 0x3c8   :  { %v354_v37 = vpop.xlane.xlu0 %353 }
 0x3c9   :  { %3017 = vrcp.f32 %v354_v37 }
 0x3cc   :  { %v469_v44 = vpop.permute.xlu0 %468 }
 0x3cd   :  { %v474_v46 = vsel %vm252_vm3, %v469_v44, 0 }
 0x3ce   :  { %v3016_v38 = vpop.eup %3015 }
 0x3cf   :  { %v3377_v39 = vmul.f32 %v3016_v38, %v3329_v57 }
 0x3d0   :  { %v464_v40 = vpop.xlane.xlu1 %463 }
 0x3d1   :  { %3019 = vrcp.f32 %v464_v40  ;;  %v246_v41 = vpack.c.bf16 %v3377_v39, %v3377_v39 }
 0x3d3   :  { %2713 = vmatmul.mubr.msk.bf16.vlgmr.msra.gmra.mxu1 %vm188_vm2, %v246_v41 }
 0x3d4   :  { %2723 = vmatpush3.bf16.msra.mxu1 %v364_v42  ;;  %2724 = vmatprep.mubr.msk.bf16.mxu1 %vm3103_vm0, %v3102_v0  ;;  %v579_v49 = vpop.permute.xlu1 %578 }
 0x3d5   :  { %2734 = vmatprep.subr.bf16.mxu1 %v3102_v0  ;;  %v584_v51 = vsel %vm252_vm3, %v579_v49, 0 }
 0x3d6   :  { %v3018_v29 = vpop.eup %3017 }
 0x3d7   :  { %v3387_v43 = vmul.f32 %v3018_v29, %v3333_v61 }
 0x3d9   :  { %v357_v45 = vpack.c.bf16 %v3387_v43, %v3387_v43 }
 0x3db   :  { %2725 = vmatmul.mubr.msk.bf16.vlgmr.msra.gmra.mxu1 %vm188_vm2, %v357_v45 }
 0x3dc   :  { %2735 = vmatpush3.bf16.msra.mxu1 %v474_v46  ;;  %2736 = vmatprep.mubr.msk.bf16.mxu1 %vm3103_vm0, %v3102_v0 }
 0x3dd   :  { %2746 = vmatprep.subr.bf16.mxu1 %v3102_v0 }
 0x3de   :  { %v3020_v47 = vpop.eup %3019 }
 0x3df   :  { %v3397_v48 = vmul.f32 %v3020_v47, %v3337_v62 }
 0x3e1   :  { %v467_v50 = vpack.c.bf16 %v3397_v48, %v3397_v48 }
 0x3e3   :  { %2737 = vmatmul.mubr.msk.bf16.vlgmr.msra.gmra.mxu1 %vm188_vm2, %v467_v50 }
 0x3e4   :  { %2747 = vmatpush3.bf16.msra.mxu1 %v584_v51  ;;  %2748 = vmatprep.mubr.msk.bf16.mxu1 %vm3103_vm0, %v3102_v0 }
 0x3e5   :  { %2758 = vmatprep.subr.bf16.mxu1 %v3102_v0 }
 0x3fd   :  { %v574_v52 = vpop.xlane.xlu0 %573 }
 0x3fe   :  { %3021 = vrcp.f32 %v574_v52 }
 0x401   :  { %v715_v56 = vpop.xlane.xlu0 %714 }
 0x402   :  { %3023 = vrcp.f32 %v715_v56 }
 0x405   :  { %v825_v58 = vpop.xlane.xlu1 %824  ;;  %v935_v59 = vpop.xlane.xlu0 %934 }
 0x406   :  { %3025 = vrcp.f32 %v825_v58 }
 0x407   :  { %3027 = vrcp.f32 %v935_v59 }
 0x409   :  { %v830_v3 = vpop.permute.xlu1 %829 }
 0x40a   :  { %v835_v6 = vsel %vm252_vm3, %v830_v3, 0 }
 0x40b   :  { %v3022_v53 = vpop.eup %3021 }
 0x40c   :  { %v3406_v55 = vmul.f32 %v3022_v53, %v3006_v28 }
 0x40d   :  { %v940_v12 = vpop.permute.xlu1 %939 }
 0x40e   :  { %v577_v57 = vpack.c.bf16 %v3406_v55, %v3406_v55  ;;  %v945_v16 = vsel %vm252_vm3, %v940_v12, 0 }
 0x40f   :  { %v3024_v61 = vpop.eup %3023 }
 0x410   :  { %2749 = vmatmul.mubr.msk.bf16.vlgmr.msra.gmra.mxu1 %vm188_vm2, %v577_v57  ;;  %v3414_v62 = vmul.f32 %v3024_v61, %v3351_v24 }
 0x411   :  { %2760 = vmatprep.mubr.msk.bf16.mxu1 %vm3103_vm0, %v3102_v0  ;;  %v1050_v18 = vpop.permute.xlu1 %1049 }
 0x412   :  { %v718_v4 = vpack.c.bf16 %v3414_v62, %v3414_v62  ;;  %v1055_v28 = vsel %vm252_vm3, %v1050_v18, 0 }
 0x413   :  { %v3026_v5 = vpop.eup %3025 }
 0x414   :  { %v3426_v7 = vmul.f32 %v3026_v5, %v3353_v15  ;;  %v3028_v14 = vpop.eup %3027 }
 0x415   :  { %v3436_v17 = vmul.f32 %v3028_v14, %v3357_v25  ;;  %v1136_v40 = vpop.permute.xlu1 %1135 }
 0x416   :  { %v828_v13 = vpack.c.bf16 %v3426_v7, %v3426_v7  ;;  %2801 = vmatpush3.bf16.msra.mxu0 %v1136_v40 }
 0x417   :  { %v938_v19 = vpack.c.bf16 %v3436_v17, %v3436_v17  ;;  %2802 = vmatprep.subr.bf16.mxu0 %v3102_v0 }
 0x41d   :  { %v1045_v54 = vpop.xlane.xlu0 %1044 }
 0x41e   :  { %3029 = vrcp.f32 %v1045_v54 }
 0x421   :  { %v720_v60 = vpop.permute.xlu0 %719 }
 0x422   :  { %v725_v63 = vsel %vm252_vm3, %v720_v60, 0 }
 0x423   :  { %2759 = vmatpush3.bf16.msra.mxu1 %v725_v63 }
 0x424   :  { %2770 = vmatprep.subr.bf16.mxu1 %v3102_v0 }
 0x426   :  { %2761 = vmatmul.mubr.msk.bf16.vlgmr.msra.gmra.mxu1 %vm188_vm2, %v718_v4 }
 0x427   :  { %2771 = vmatpush3.bf16.msra.mxu1 %v835_v6  ;;  %2772 = vmatprep.mubr.msk.bf16.mxu1 %vm3103_vm0, %v3102_v0 }
 0x428   :  { %2782 = vmatprep.subr.bf16.mxu1 %v3102_v0 }
 0x42b   :  { %v3030_v21 = vpop.eup %3029 }
 0x42c   :  { %v3445_v22 = vmul.f32 %v3030_v21, %v3368_v34 }
 0x42e   :  { %2773 = vmatmul.mubr.msk.bf16.vlgmr.msra.gmra.mxu1 %vm188_vm2, %v828_v13  ;;  %v1048_v24 = vpack.c.bf16 %v3445_v22, %v3445_v22 }
 0x42f   :  { %2783 = vmatpush3.bf16.msra.mxu1 %v945_v16  ;;  %2784 = vmatprep.mubr.msk.bf16.mxu1 %vm3103_vm0, %v3102_v0 }
 0x430   :  { %2794 = vmatprep.subr.bf16.mxu1 %v3102_v0 }
 0x436   :  { %2785 = vmatmul.mubr.msk.bf16.vlgmr.msra.gmra.mxu1 %vm188_vm2, %v938_v19 }
 0x437   :  { %2795 = vmatpush3.bf16.msra.mxu1 %v1055_v28  ;;  %2796 = vmatprep.mubr.msk.bf16.mxu1 %vm3103_vm0, %v3102_v0 }
 0x438   :  { %2808 = vmatprep.subr.bf16.mxu1 %v3102_v0 }
 0x43e   :  { %2797 = vmatmul.mubr.msk.bf16.vlgmr.msra.gmra.mxu1 %vm188_vm2, %v1048_v24 }
 0x43f   :  { %2809 = vmatpush3.bf16.msra.mxu1 %v3171_v1  ;;  %2812 = vmatprep.mubr.msk.bf16.mxu1 %vm3103_vm0, %v3102_v0 }
 0x440   :  { %2810 = vmatprep.subr.bf16.mxu1 %v3102_v0 }
 0x443   :  { %2811 = vmatpush3.bf16.msra.mxu1 %v3178_v2 }
 0x444   :  { %2822 = vmatprep.subr.bf16.mxu1 %v3102_v0 }
 0x493   :  { %v290_v15 = vpop.f32.mrf.mxu1 }
 0x495   :  { %v2714_v23 = vpop.f32.mrf.mxu1 }
 0x497   :  { %v293_v25 = vpop.f32.mrf.mxu1 }
 0x498   :  { %v1286_v25 = vsel %vm188_vm2, %v3222_v20, 0 }
 0x499   :  { %v2715_v26 = vpop.f32.mrf.mxu1 }
 0x49b   :  { %v400_v27 = vpop.f32.mrf.mxu1 }
 0x49d   :  { %v2726_v30 = vpop.f32.mrf.mxu1 }
 0x49f   :  { %v403_v1 = vpop.f32.mrf.mxu1 }
 0x4a1   :  { %v2727_v31 = vpop.f32.mrf.mxu1 }
 0x4a3   :  { %v510_v32 = vpop.f32.mrf.mxu1 }
 0x4a5   :  { %v2738_v33 = vpop.f32.mrf.mxu1 }
 0x4a7   :  { %v513_v34 = vpop.f32.mrf.mxu1 }
 0x4a9   :  { %v2739_v35 = vpop.f32.mrf.mxu1 }
 0x4d0   :  { %v620_v36 = vpop.f32.mrf.mxu1 }
 0x4d2   :  { %v2750_v2 = vpop.f32.mrf.mxu1 }
 0x4d4   :  { %v623_v37 = vpop.f32.mrf.mxu1 }
 0x4d6   :  { %v2751_v38 = vpop.f32.mrf.mxu1 }
 0x4e6   :  { %v761_v8 = vpop.f32.mrf.mxu1 }
 0x4e8   :  { %v2762_v41 = vpop.f32.mrf.mxu1 }
 0x4ea   :  { %v764_v42 = vpop.f32.mrf.mxu1 }
 0x4ec   :  { %v2763_v29 = vpop.f32.mrf.mxu1 }
 0x4ee   :  { %v871_v44 = vpop.f32.mrf.mxu1 }
 0x4ef   :  { %v2959_v45 = vpack.i.bf16 %v871_v44, %v400_v27 }
 0x4f0   :  { %v2774_v46 = vpop.f32.mrf.mxu1 }
 0x4f1   :  { %2960 = vrot.lane.b32.xlu1 %v2959_v45, %s3101_s28 }
 0x4f2   :  { %v874_v47 = vpop.f32.mrf.mxu1 }
 0x4f4   :  { %v2775_v49 = vpop.f32.mrf.mxu1 }
 0x4f6   :  { %v981_v50 = vpop.f32.mrf.mxu1 }
 0x4f7   :  { %v2964_v51 = vpack.i.bf16 %v981_v50, %v510_v32 }
 0x4f8   :  { %v2786_v52 = vpop.f32.mrf.mxu1 }
 0x4f9   :  { %2965 = vrot.lane.b32.xlu0 %v2964_v51, %s3116_s14 }
 0x4fa   :  { %v984_v53 = vpop.f32.mrf.mxu1 }
 0x4fb   :  { %v2565_v53 = vld [vmem:[#allocation2 + $0x2] ss:$0 sm:$0xff] }
 0x4fc   :  { %v2787_v56 = vpop.f32.mrf.mxu1 }
 0x4fd   :  { %1133 = vrot.lane.b32.xlu0 %v3200_v9, %s3115_s13 }
 0x4fe   :  { %v1091_v57 = vpop.f32.mrf.mxu1 }
 0x4ff   :  { %v2969_v58 = vpack.i.bf16 %v1091_v57, %v620_v36 }
 0x500   :  { %v2798_v59 = vpop.f32.mrf.mxu1 }
 0x501   :  { %2970 = vrot.lane.b32.xlu1 %v2969_v58, %s3117_s15  ;;  %v2566_v59 = vld [vmem:[#allocation2 + $0x3] ss:$0 sm:$0xff] }
 0x502   :  { %v1094_v61 = vpop.f32.mrf.mxu1 }
 0x504   :  { %v2799_v54 = vpop.f32.mrf.mxu1 }
 0x563   :  { %v2961_v63 = vpop.permute.xlu1 %2960 }
 0x564   :  { %v2963_v4 = vunpack.i.h.bf16 %v2961_v63  ;;  %v2962_v5 = vunpack.i.l.bf16 %v2961_v63 }
 0x566   :  { %v1124_v13 = vsel %vm188_vm2, %v761_v8, %v2963_v4  ;;  %v655_v14 = vsel %vm188_vm2, %v290_v15, %v2962_v5  ;;  %v2563_v15 = vld [vmem:[#allocation2 + $0x1] ss:$0 sm:$0xff]  ;;  %v2567_v4 = vld [vmem:[#allocation2 + $0x4] ss:$0 sm:$0xff] }
 0x56b   :  { %v2966_v60 = vpop.permute.xlu0 %2965 }
 0x56c   :  { %v2968_v6 = vunpack.i.h.bf16 %v2966_v60  ;;  %v2967_v12 = vunpack.i.l.bf16 %v2966_v60 }
 0x56e   :  { %v1125_v19 = vsel %vm639_vm4, %v1124_v13, %v2968_v6  ;;  %v656_v21 = vsel %vm639_vm4, %v655_v14, %v2967_v12 }
 0x56f   :  { %v1134_v3 = vpop.permute.xlu0 %1133 }
 0x570   :  { %2803 = vmatpush3.bf16.msra.mxu0 %v1134_v3 }
 0x571   :  { %2816 = vmatprep.subr.bf16.mxu0 %v3102_v0 }
 0x573   :  { %v2971_v9 = vpop.permute.xlu1 %2970 }
 0x574   :  { %v2973_v16 = vunpack.i.h.bf16 %v2971_v9  ;;  %v2972_v18 = vunpack.i.l.bf16 %v2971_v9 }
 0x576   :  { %v1126_v28 = vsel %vm641_vm5, %v1125_v19, %v2973_v16  ;;  %v657_v24 = vsel %vm641_vm5, %v656_v21, %v2972_v18  ;;  %v3509_v21 = vrot.slane %v3222_v20, 4 }
 0x577   :  { %v1127_v23 = vpack.c.bf16 %v1126_v28, %v657_v24 }
 0x579   :  { %2805 = vmatmul.mubr.msk.bf16.vlgmr.msra.gmra.mxu0 %vm71_vm1, %v1127_v23 }
 0x57a   :  { %2817 = vmatpush3.bf16.xpose.msra.mxu0 %v1286_v25  ;;  %2818 = vmatprep.mubr.msk.bf16.mxu0 %vm3103_vm0, %v3102_v0 }
 0x57b   :  { %2828 = vmatprep.subr.bf16.mxu0 %v3102_v0 }
 0x639   :  { %v1176_v26 = vpop.f32.mrf.mxu0 }
 0x63a   :  { %v1177_v27 = vadd.f32 %v2563_v15, %v1176_v26 }
 0x63b   :  { %v2806_v30 = vpop.f32.mrf.mxu0 }
 0x63c   :  { %v1183_v1 = vadd.f32 %v1177_v27, %v3207_v10  ;;  %v1756_v30 = vsel %vm188_vm2, %v3509_v21, 0 }
 0x63d   :  { %v1179_v31 = vpop.f32.mrf.mxu0 }
 0x63e   :  { %v1180_v32 = vadd.f32 %v2563_v15, %v1179_v31  ;;  %v1187_v33 = vsel %vm71_vm1, %v1183_v1, 0.0 }
 0x63f   :  { %1188 = vadd.xlane.f32.xlu1 %v1187_v33  ;;  %v2807_v34 = vpop.f32.mrf.mxu0 }
 0x640   :  { %v1184_v35 = vadd.f32 %v1180_v32, %v3212_v11 }
 0x642   :  { %v1190_v36 = vsel %vm71_vm1, %v1184_v35, 0.0 }
 0x643   :  { %1191 = vadd.xlane.f32.xlu0 %v1190_v36 }
 0x6c8   :  { %v1189_v2 = vpop.xlane.xlu1 %1188 }
 0x6c9   :  { %v1194_v37 = vmul.f32 0.03125, %v1189_v2 }
 0x6cb   :  { %v1196_v38 = vsub.f32 %v1183_v1, %v1194_v37 }
 0x6cc   :  { %v1192_v40 = vpop.xlane.xlu0 %1191 }
 0x6cd   :  { %v1195_v8 = vmul.f32 0.03125, %v1192_v40  ;;  %v1198_v41 = vmul.f32 %v1196_v38, %v1196_v38 }
 0x6cf   :  { %v1197_v42 = vsub.f32 %v1184_v35, %v1195_v8  ;;  %v1200_v10 = vsel %vm71_vm1, %v1198_v41, 0.0 }
 0x6d0   :  { %1201 = vadd.xlane.f32.xlu0 %v1200_v10 }
 0x6d1   :  { %v1199_v29 = vmul.f32 %v1197_v42, %v1197_v42 }
 0x6d3   :  { %v1203_v44 = vsel %vm71_vm1, %v1199_v29, 0.0 }
 0x6d4   :  { %1204 = vadd.xlane.f32.xlu1 %v1203_v44 }
 0x6e6   :  { %1392 = vrot.lane.b32.xlu0 %v3222_v20, %s3105_s0 }
 0x759   :  { %v1202_v11 = vpop.xlane.xlu0 %1201 }
 0x75a   :  { %v1206_v45 = vmul.f32 0.03125, %v1202_v11 }
 0x75c   :  { %v1208_v46 = vadd.f32 1e-05, %v1206_v45 }
 0x75d   :  { %v1205_v47 = vpop.xlane.xlu1 %1204  ;;  %v1393_v14 = vpop.permute.xlu0 %1392 }
 0x75e   :  { %3031 = vrsqrt.f32 %v1208_v46  ;;  %v1207_v49 = vmul.f32 0.03125, %v1205_v47  ;;  %v1398_v18 = vsel %vm188_vm2, %v1393_v14, 0 }
 0x760   :  { %v1209_v50 = vadd.f32 1e-05, %v1207_v49 }
 0x762   :  { %3033 = vrsqrt.f32 %v1209_v50 }
 0x76b   :  { %v3032_v51 = vpop.eup %3031 }
 0x76c   :  { %v1212_v52 = vmul.f32 %v3032_v51, %v1196_v38  ;;  %v1278_v38 = vld [vmem:[%s3812_s3] sm:$0xff] }
 0x76e   :  { %v1218_v58 = vmul.f32 %v2565_v53, %v1212_v52 }
 0x76f   :  { %v3034_v56 = vpop.eup %3033 }
 0x770   :  { %v1213_v57 = vmul.f32 %v3034_v56, %v1197_v42  ;;  %v3486_v54 = vadd.f32 %v2566_v59, %v1218_v58 }
 0x772   :  { %v1219_v61 = vmul.f32 %v2565_v53, %v1213_v57 }
 0x774   :  { %v3488_v60 = vadd.f32 %v2566_v59, %v1219_v61 }
 0x776   :  { %v1226_v63 = vpack.c.bf16 %v3488_v60, %v3486_v54 }
 0x778   :  { %2813 = vmatmul.mubr.msk.bf16.vlgmr.msra.gmra.mxu1 %vm71_vm1, %v1226_v63 }
 0x779   :  { %2824 = vmatprep.mubr.msk.bf16.mxu1 %vm3103_vm0, %v3102_v0 }
 0x838   :  { %v1271_v3 = vpop.f32.mrf.mxu1 }
 0x839   :  { %v1272_v12 = vadd.f32 %v2567_v4, %v1271_v3 }
 0x83a   :  { %v2814_v5 = vpop.f32.mrf.mxu1 }
 0x83b   :  { %v1279_v5 = vld [vmem:[%s3812_s3 + $0x8] sm:$0xff] }
 0x83c   :  { %v1274_v6 = vpop.f32.mrf.mxu1 }
 0x83d   :  { %v1275_v9 = vadd.f32 %v2567_v4, %v1274_v6 }
 0x83e   :  { %v2815_v13 = vpop.f32.mrf.mxu1 }
 0x83f   :  { %v1280_v16 = vpack.c.bf16 %v1275_v9, %v1272_v12 }
 0x841   :  { %1500 = vrot.lane.b32.xlu0 %v1280_v16, %s3106_s23  ;;  %1390 = vrot.lane.b32.xlu1 %v1280_v16, %s3105_s0  ;;  %v1750_v19 = vrot.slane %v1280_v16, 4 }
 0x842   :  { %2819 = vmatmul.mubr.msk.bf16.vlgmr.msra.gmra.mxu0 %vm188_vm2, %v1280_v16 }
 0x843   :  { %2829 = vmatpush3.bf16.xpose.msra.mxu0 %v1398_v18  ;;  %2830 = vmatprep.mubr.msk.bf16.mxu0 %vm3103_vm0, %v3102_v0 }
 0x844   :  { %2840 = vmatprep.subr.bf16.mxu0 %v3102_v0 }
 0x845   :  { %1610 = vrot.lane.b32.xlu0 %v1280_v16, %s3108_s25  ;;  %1502 = vrot.lane.b32.xlu1 %v3222_v20, %s3106_s23 }
 0x849   :  { %1612 = vrot.lane.b32.xlu1 %v3222_v20, %s3108_s25  ;;  %1858 = vrot.lane.b32.xlu0 %v1750_v19, %s3105_s0 }
 0x84d   :  { %1860 = vrot.lane.b32.xlu1 %v3509_v21, %s3105_s0  ;;  %1968 = vrot.lane.b32.xlu0 %v1750_v19, %s3106_s23 }
 0x851   :  { %1970 = vrot.lane.b32.xlu1 %v3509_v21, %s3106_s23  ;;  %2078 = vrot.lane.b32.xlu0 %v1750_v19, %s3108_s25 }
 0x855   :  { %2080 = vrot.lane.b32.xlu1 %v3509_v21, %s3108_s25 }
 0x8b3   :  { %v1391_v28 = vpop.permute.xlu1 %1390  ;;  %v1501_v15 = vpop.permute.xlu0 %1500 }
 0x8b4   :  { %2831 = vmatmul.mubr.msk.bf16.vlgmr.msra.gmra.mxu0 %vm188_vm2, %v1391_v28 }
 0x8b5   :  { %2842 = vmatprep.mubr.msk.bf16.mxu0 %vm3103_vm0, %v3102_v0 }
 0x8b7   :  { %v1503_v24 = vpop.permute.xlu1 %1502  ;;  %v1611_v27 = vpop.permute.xlu0 %1610 }
 0x8b8   :  { %v1508_v23 = vsel %vm188_vm2, %v1503_v24, 0 }
 0x8b9   :  { %2841 = vmatpush3.bf16.xpose.msra.mxu0 %v1508_v23 }
 0x8ba   :  { %2852 = vmatprep.subr.bf16.mxu0 %v3102_v0 }
 0x8bb   :  { %v1613_v25 = vpop.permute.xlu1 %1612  ;;  %v1859_v33 = vpop.permute.xlu0 %1858 }
 0x8bc   :  { %v1618_v26 = vsel %vm188_vm2, %v1613_v25, 0 }
 0x8bf   :  { %v1861_v1 = vpop.permute.xlu1 %1860  ;;  %v1969_v36 = vpop.permute.xlu0 %1968 }
 0x8c0   :  { %2843 = vmatmul.mubr.msk.bf16.vlgmr.msra.gmra.mxu0 %vm188_vm2, %v1501_v15  ;;  %v1866_v31 = vsel %vm188_vm2, %v1861_v1, 0 }
 0x8c1   :  { %2853 = vmatpush3.bf16.xpose.msra.mxu0 %v1618_v26  ;;  %2854 = vmatprep.mubr.msk.bf16.mxu0 %vm3103_vm0, %v3102_v0 }
 0x8c2   :  { %2864 = vmatprep.subr.bf16.mxu0 %v3102_v0 }
 0x8c3   :  { %v1971_v32 = vpop.permute.xlu1 %1970  ;;  %v2079_v37 = vpop.permute.xlu0 %2078 }
 0x8c4   :  { %v1976_v34 = vsel %vm188_vm2, %v1971_v32, 0 }
 0x8c7   :  { %v2081_v35 = vpop.permute.xlu1 %2080 }
 0x8c8   :  { %2855 = vmatmul.mubr.msk.bf16.vlgmr.msra.gmra.mxu0 %vm188_vm2, %v1611_v27  ;;  %v2086_v2 = vsel %vm188_vm2, %v2081_v35, 0 }
 0x8c9   :  { %2865 = vmatpush3.bf16.xpose.msra.mxu0 %v1756_v30  ;;  %2866 = vmatprep.mubr.msk.bf16.mxu0 %vm3103_vm0, %v3102_v0 }
 0x8ca   :  { %2876 = vmatprep.subr.bf16.mxu0 %v3102_v0 }
 0x8d0   :  { %2867 = vmatmul.mubr.msk.bf16.vlgmr.msra.gmra.mxu0 %vm188_vm2, %v1750_v19 }
 0x8d1   :  { %2877 = vmatpush3.bf16.xpose.msra.mxu0 %v1866_v31  ;;  %2878 = vmatprep.mubr.msk.bf16.mxu0 %vm3103_vm0, %v3102_v0 }
 0x8d2   :  { %2888 = vmatprep.subr.bf16.mxu0 %v3102_v0 }
 0x8d8   :  { %2879 = vmatmul.mubr.msk.bf16.vlgmr.msra.gmra.mxu0 %vm188_vm2, %v1859_v33 }
 0x8d9   :  { %2889 = vmatpush3.bf16.xpose.msra.mxu0 %v1976_v34  ;;  %2890 = vmatprep.mubr.msk.bf16.mxu0 %vm3103_vm0, %v3102_v0 }
 0x8da   :  { %2900 = vmatprep.subr.bf16.mxu0 %v3102_v0 }
 0x8e0   :  { %2891 = vmatmul.mubr.msk.bf16.vlgmr.msra.gmra.mxu0 %vm188_vm2, %v1969_v36 }
 0x8e1   :  { %2901 = vmatpush3.bf16.xpose.msra.mxu0 %v2086_v2  ;;  %2902 = vmatprep.mubr.msk.bf16.mxu0 %vm3103_vm0, %v3102_v0 }
 0x8e2   :  { %2912 = vmatprep.subr.bf16.mxu0 %v3102_v0 }
 0x8e8   :  { %2903 = vmatmul.mubr.msk.bf16.vlgmr.msra.gmra.mxu0 %vm188_vm2, %v2079_v37 }
 0x8e9   :  { %2916 = vmatprep.mubr.msk.bf16.mxu0 %vm3103_vm0, %v3102_v0 }
 0x902   :  { %v1322_v40 = vpop.f32.mrf.mxu0 }
 0x903   :  { %v1323_v8 = vadd.f32 %v1322_v40, %v1278_v38 }
 0x904   :  { %v2820_v41 = vpop.f32.mrf.mxu0 }
 0x905   :  { %v1328_v42 = vsel %vm188_vm2, %v1323_v8, -inf }
 0x906   :  { %1329 = vmax.xlane.f32.xlu1 %v1328_v42  ;;  %v1325_v10 = vpop.f32.mrf.mxu0 }
 0x908   :  { %v2821_v29 = vpop.f32.mrf.mxu0 }
 0x974   :  { %v1434_v44 = vpop.f32.mrf.mxu0 }
 0x975   :  { %v1435_v11 = vadd.f32 %v1434_v44, %v1278_v38 }
 0x976   :  { %v2832_v45 = vpop.f32.mrf.mxu0 }
 0x977   :  { %v1440_v46 = vsel %vm188_vm2, %v1435_v11, -inf }
 0x978   :  { %1441 = vmax.xlane.f32.xlu0 %v1440_v46  ;;  %v1437_v47 = vpop.f32.mrf.mxu0 }
 0x97a   :  { %v2833_v49 = vpop.f32.mrf.mxu0 }
 0x980   :  { %v1544_v50 = vpop.f32.mrf.mxu0 }
 0x981   :  { %v1545_v51 = vadd.f32 %v1544_v50, %v1278_v38 }
 0x982   :  { %v2844_v52 = vpop.f32.mrf.mxu0 }
 0x983   :  { %v1550_v53 = vsel %vm188_vm2, %v1545_v51, -inf }
 0x984   :  { %1551 = vmax.xlane.f32.xlu0 %v1550_v53  ;;  %v1547_v56 = vpop.f32.mrf.mxu0 }
 0x986   :  { %v2845_v57 = vpop.f32.mrf.mxu0 }
 0x988   :  { %v1654_v58 = vpop.f32.mrf.mxu0 }
 0x989   :  { %v1655_v59 = vadd.f32 %v1654_v58, %v1278_v38 }
 0x98a   :  { %v2856_v61 = vpop.f32.mrf.mxu0 }
 0x98b   :  { %v1660_v63 = vsel %vm188_vm2, %v1655_v59, -inf }
 0x98c   :  { %1661 = vmax.xlane.f32.xlu1 %v1660_v63  ;;  %v1657_v3 = vpop.f32.mrf.mxu0 }
 0x98e   :  { %v2857_v4 = vpop.f32.mrf.mxu0 }
 0x98f   :  { %v1330_v36 = vpop.xlane.xlu1 %1329 }
 0x990   :  { %v1792_v6 = vpop.f32.mrf.mxu0  ;;  %v1331_v2 = vsub.f32 %v1323_v8, %v1330_v36 }
 0x991   :  { %v1793_v12 = vadd.f32 %v1792_v6, %v1279_v5 }
 0x992   :  { %v2868_v9 = vpop.f32.mrf.mxu0  ;;  %v1332_v37 = vmul.f32 1.442695, %v1331_v2 }
 0x993   :  { %v1798_v13 = vsel %vm188_vm2, %v1793_v12, -inf }
 0x994   :  { %1799 = vmax.xlane.f32.xlu0 %v1798_v13  ;;  %v1795_v14 = vpop.f32.mrf.mxu0  ;;  %3035 = vpow2.f32 %v1332_v37 }
 0x996   :  { %v2869_v16 = vpop.f32.mrf.mxu0 }
 0x998   :  { %v1902_v18 = vpop.f32.mrf.mxu0 }
 0x999   :  { %v3564_v19 = vadd.f32 %v1902_v18, %v1279_v5 }
 0x99a   :  { %v2880_v28 = vpop.f32.mrf.mxu0 }
 0x99b   :  { %v1908_v24 = vsel %vm188_vm2, %v3564_v19, -inf }
 0x99c   :  { %1909 = vmax.xlane.f32.xlu1 %v1908_v24  ;;  %v1905_v23 = vpop.f32.mrf.mxu0 }
 0x99e   :  { %v2881_v25 = vpop.f32.mrf.mxu0 }
 0x9a0   :  { %v2012_v15 = vpop.f32.mrf.mxu0 }
 0x9a1   :  { %v2013_v26 = vadd.f32 %v2012_v15, %v1279_v5  ;;  %v3574_v41 = vpop.eup %3035 }
 0x9a2   :  { %v2892_v27 = vpop.f32.mrf.mxu0  ;;  %v1334_v42 = vsel %vm188_vm2, %v3574_v41, 0.0 }
 0x9a3   :  { %v2018_v30 = vsel %vm188_vm2, %v2013_v26, -inf }
 0x9a4   :  { %2019 = vmax.xlane.f32.xlu0 %v2018_v30  ;;  %v2015_v1 = vpop.f32.mrf.mxu0 }
 0x9a6   :  { %v2893_v31 = vpop.f32.mrf.mxu0 }
 0x9a8   :  { %v2122_v32 = vpop.f32.mrf.mxu0 }
 0x9a9   :  { %v2123_v38 = vadd.f32 %v2122_v32, %v1279_v5 }
 0x9aa   :  { %v2904_v33 = vpop.f32.mrf.mxu0 }
 0x9ab   :  { %v2128_v40 = vsel %vm188_vm2, %v2123_v38, -inf }
 0x9ac   :  { %v2125_v34 = vpop.f32.mrf.mxu0 }
 0x9ad   :  { %1452 = vrot.lane.b32.xlu1 %v3222_v20, %s3107_s24  ;;  %v3075_v34 = vld [vmem:[%s3813_s4 + $0x1c] ss:$12 sps:$4 sm:$0xff]  }
 0x9ae   :  { %v2905_v35 = vpop.f32.mrf.mxu0 }
 0x9ba   :  { %1341 = vrot.lane.b32.xlu0 %v3222_v20, %s3104_s6 }
 0x9d1   :  { %2129 = vmax.xlane.f32.xlu1 %v2128_v40 }
 0x9d9   :  { %1335 = vadd.xlane.f32.xlu0 %v1334_v42 }
 0x9e2   :  { %1562 = vrot.lane.b32.xlu1 %v3222_v20, %s3109_s26 }
 0xa01   :  { %v1442_v10 = vpop.xlane.xlu0 %1441 }
 0xa02   :  { %v1443_v29 = vsub.f32 %v1435_v11, %v1442_v10 }
 0xa04   :  { %v1444_v44 = vmul.f32 1.442695, %v1443_v29 }
 0xa06   :  { %3037 = vpow2.f32 %v1444_v44 }
 0xa0d   :  { %v1552_v8 = vpop.xlane.xlu0 %1551 }
 0xa0e   :  { %v1553_v45 = vsub.f32 %v1545_v51, %v1552_v8 }
 0xa10   :  { %v1554_v46 = vmul.f32 1.442695, %v1553_v45 }
 0xa12   :  { %3039 = vpow2.f32 %v1554_v46 }
 0xa13   :  { %v3580_v47 = vpop.eup %3037 }
 0xa14   :  { %v1446_v49 = vsel %vm188_vm2, %v3580_v47, 0.0 }
 0xa15   :  { %v1662_v50 = vpop.xlane.xlu1 %1661  ;;  %1447 = vadd.xlane.f32.xlu1 %v1446_v49 }
 0xa16   :  { %v1663_v52 = vsub.f32 %v1655_v59, %v1662_v50 }
 0xa18   :  { %v1664_v53 = vmul.f32 1.442695, %v1663_v52 }
 0xa1a   :  { %3041 = vpow2.f32 %v1664_v53 }
 0xa1d   :  { %v1800_v56 = vpop.xlane.xlu0 %1799 }
 0xa1e   :  { %v1801_v57 = vsub.f32 %v1793_v12, %v1800_v56 }
 0xa1f   :  { %v3584_v58 = vpop.eup %3039 }
 0xa20   :  { %v1802_v11 = vmul.f32 1.442695, %v1801_v57  ;;  %v1556_v51 = vsel %vm188_vm2, %v3584_v58, 0.0 }
 0xa21   :  { %1557 = vadd.xlane.f32.xlu0 %v1556_v51 }
 0xa22   :  { %3043 = vpow2.f32 %v1802_v11 }
 0xa25   :  { %v1910_v13 = vpop.xlane.xlu1 %1909 }
 0xa26   :  { %v1911_v14 = vsub.f32 %v3564_v19, %v1910_v13 }
 0xa27   :  { %v3588_v61 = vpop.eup %3041 }
 0xa28   :  { %v1666_v63 = vsel %vm188_vm2, %v3588_v61, 0.0  ;;  %v1912_v28 = vmul.f32 1.442695, %v1911_v14 }
 0xa29   :  { %1667 = vadd.xlane.f32.xlu1 %v1666_v63  ;;  %v1453_v25 = vpop.permute.xlu1 %1452 }
 0xa2a   :  { %v1458_v33 = vsel %vm252_vm3, %v1453_v25, 0 }
 0xa2d   :  { %v2020_v3 = vpop.xlane.xlu0 %2019 }
 0xa2e   :  { %v2021_v59 = vsub.f32 %v2013_v26, %v2020_v3 }
 0xa2f   :  { %v3592_v4 = vpop.eup %3043 }
 0xa30   :  { %v2022_v5 = vmul.f32 1.442695, %v2021_v59  ;;  %v1804_v6 = vsel %vm188_vm2, %v3592_v4, 0.0 }
 0xa31   :  { %v1342_v12 = vpop.permute.xlu0 %1341  ;;  %1805 = vadd.xlane.f32.xlu1 %v1804_v6 }
 0xa32   :  { %3045 = vpow2.f32 %v2022_v5  ;;  %v1347_v9 = vsel %vm252_vm3, %v1342_v12, 0 }
 0xa33   :  { %2823 = vmatpush3.bf16.msra.mxu1 %v1347_v9  ;;  %3047 = vpow2.f32 %v1912_v28 }
 0xa34   :  { %2834 = vmatprep.subr.bf16.mxu1 %v3102_v0 }
 0xa37   :  { %1672 = vrot.lane.b32.xlu0 %v3222_v20, %s3110_s27 }
 0xa3f   :  { %v3601_v16 = vpop.eup %3045 }
 0xa40   :  { %v2024_v18 = vsel %vm188_vm2, %v3601_v16, 0.0  ;;  %v3605_v24 = vpop.eup %3047 }
 0xa41   :  { %2025 = vadd.xlane.f32.xlu1 %v2024_v18  ;;  %v1914_v23 = vsel %vm188_vm2, %v3605_v24, 0.0 }
 0xa56   :  { %1915 = vadd.xlane.f32.xlu0 %v1914_v23 }
 0xa5a   :  { %v2130_v15 = vpop.xlane.xlu1 %2129 }
 0xa5b   :  { %v2131_v20 = vsub.f32 %v2123_v38, %v2130_v15 }
 0xa5d   :  { %v2132_v26 = vmul.f32 1.442695, %v2131_v20 }
 0xa5e   :  { %v1563_v35 = vpop.permute.xlu1 %1562 }
 0xa5f   :  { %3049 = vpow2.f32 %v2132_v26 }
 0xa62   :  { %v1336_v19 = vpop.xlane.xlu0 %1335 }
 0xa63   :  { %3051 = vrcp.f32 %v1336_v19 }
 0xa6c   :  { %v3609_v27 = vpop.eup %3049  ;;  %1920 = vrot.lane.b32.xlu0 %v3509_v21, %s3107_s24 }
 0xa6d   :  { %v2134_v30 = vsel %vm188_vm2, %v3609_v27, 0.0 }
 0xa6e   :  { %2135 = vadd.xlane.f32.xlu1 %v2134_v30 }
 0xa70   :  { %v3052_v1 = vpop.eup %3051  ;;  %2030 = vrot.lane.b32.xlu0 %v3509_v21, %s3109_s26 }
 0xa71   :  { %v3618_v31 = vmul.f32 %v3052_v1, %v3574_v41 }
 0xa73   :  { %v1339_v32 = vpack.c.bf16 %v3618_v31, %v3618_v31 }
 0xa74   :  { %2140 = vrot.lane.b32.xlu0 %v3509_v21, %s3110_s27 }
 0xa75   :  { %2825 = vmatmul.mubr.msk.bf16.vlgmr.msra.gmra.mxu1 %vm188_vm2, %v1339_v32 }
 0xa76   :  { %2835 = vmatpush3.bf16.msra.mxu1 %v1458_v33  ;;  %2836 = vmatprep.mubr.msk.bf16.mxu1 %vm3103_vm0, %v3102_v0 }
 0xa77   :  { %2846 = vmatprep.subr.bf16.mxu1 %v3102_v0 }
 0xa7f   :  { %1810 = vrot.lane.b32.xlu1 %v3509_v21, %s3104_s6  ;;  %v1568_v21 = vsel %vm252_vm3, %v1563_v35, 0 }
 0xa83   :  { %2226 = vrot.lane.b32.xlu1 %v3075_v34, %s3115_s13 }
 0xa9e   :  { %v1448_v36 = vpop.xlane.xlu1 %1447 }
 0xa9f   :  { %3053 = vrcp.f32 %v1448_v36 }
 0xaaa   :  { %v1558_v2 = vpop.xlane.xlu0 %1557 }
 0xaab   :  { %3055 = vrcp.f32 %v1558_v2 }
 0xaac   :  { %v3054_v37 = vpop.eup %3053 }
 0xaad   :  { %v3636_v38 = vmul.f32 %v3054_v37, %v3580_v47 }
 0xaae   :  { %v1673_v29 = vpop.permute.xlu0 %1672 }
 0xaaf   :  { %v1451_v40 = vpack.c.bf16 %v3636_v38, %v3636_v38  ;;  %v1678_v8 = vsel %vm252_vm3, %v1673_v29, 0 }
 0xab1   :  { %2837 = vmatmul.mubr.msk.bf16.vlgmr.msra.gmra.mxu1 %vm188_vm2, %v1451_v40 }
 0xab2   :  { %2847 = vmatpush3.bf16.msra.mxu1 %v1568_v21  ;;  %v1668_v41 = vpop.xlane.xlu1 %1667  ;;  %2848 = vmatprep.mubr.msk.bf16.mxu1 %vm3103_vm0, %v3102_v0 }
 0xab3   :  { %3057 = vrcp.f32 %v1668_v41  ;;  %2858 = vmatprep.subr.bf16.mxu1 %v3102_v0 }
 0xab8   :  { %v3056_v42 = vpop.eup %3055 }
 0xab9   :  { %v3646_v10 = vmul.f32 %v3056_v42, %v3584_v58 }
 0xaba   :  { %v1806_v49 = vpop.xlane.xlu1 %1805 }
 0xabb   :  { %v1561_v44 = vpack.c.bf16 %v3646_v10, %v3646_v10  ;;  %3059 = vrcp.f32 %v1806_v49 }
 0xabd   :  { %2849 = vmatmul.mubr.msk.bf16.vlgmr.msra.gmra.mxu1 %vm188_vm2, %v1561_v44 }
 0xabe   :  { %2859 = vmatpush3.bf16.msra.mxu1 %v1678_v8  ;;  %2860 = vmatprep.mubr.msk.bf16.mxu1 %vm3103_vm0, %v3102_v0 }
 0xabf   :  { %2870 = vmatprep.subr.bf16.mxu1 %v3102_v0 }
 0xac0   :  { %v3058_v45 = vpop.eup %3057 }
 0xac1   :  { %v3656_v46 = vmul.f32 %v3058_v45, %v3588_v61 }
 0xac3   :  { %v1671_v47 = vpack.c.bf16 %v3656_v46, %v3656_v46 }
 0xac5   :  { %2861 = vmatmul.mubr.msk.bf16.vlgmr.msra.gmra.mxu1 %vm188_vm2, %v1671_v47 }
 0xac6   :  { %2872 = vmatprep.mubr.msk.bf16.mxu1 %vm3103_vm0, %v3102_v0 }
 0xac8   :  { %v3060_v53 = vpop.eup %3059 }
 0xac9   :  { %v3664_v57 = vmul.f32 %v3060_v53, %v3592_v4 }
 0xaca   :  { %v2026_v52 = vpop.xlane.xlu1 %2025 }
 0xacb   :  { %v1809_v61 = vpack.c.bf16 %v3664_v57, %v3664_v57 }
 0xadf   :  { %v1916_v50 = vpop.xlane.xlu0 %1915 }
 0xae0   :  { %3061 = vrcp.f32 %v1916_v50 }
 0xae1   :  { %3063 = vrcp.f32 %v2026_v52 }
 0xae3   :  { %v1921_v51 = vpop.permute.xlu0 %1920 }
 0xae4   :  { %v1926_v3 = vsel %vm252_vm3, %v1921_v51, 0 }
 0xae7   :  { %v2031_v4 = vpop.permute.xlu0 %2030 }
 0xae8   :  { %v2036_v12 = vsel %vm252_vm3, %v2031_v4, 0 }
 0xaeb   :  { %v2141_v13 = vpop.permute.xlu0 %2140 }
 0xaec   :  { %v2146_v28 = vsel %vm252_vm3, %v2141_v13, 0 }
 0xaed   :  { %v3062_v63 = vpop.eup %3061 }
 0xaee   :  { %v3676_v59 = vmul.f32 %v3062_v63, %v3605_v24  ;;  %v3064_v6 = vpop.eup %3063 }
 0xaef   :  { %v3686_v9 = vmul.f32 %v3064_v6, %v3601_v16 }
 0xaf0   :  { %v1919_v5 = vpack.c.bf16 %v3676_v59, %v3676_v59 }
 0xaf1   :  { %v2029_v14 = vpack.c.bf16 %v3686_v9, %v3686_v9 }
 0xaf7   :  { %v2136_v56 = vpop.xlane.xlu1 %2135 }
 0xaf8   :  { %3065 = vrcp.f32 %v2136_v56 }
 0xafb   :  { %v1811_v58 = vpop.permute.xlu1 %1810 }
 0xafc   :  { %v1816_v11 = vsel %vm252_vm3, %v1811_v58, 0 }
 0xafd   :  { %2871 = vmatpush3.bf16.msra.mxu1 %v1816_v11  ;;  %v3076_v11 = vld [vmem:[%s3813_s4 + $0x4] ss:$12 sps:$4 sm:$0xff]  }
 0xafe   :  { %2882 = vmatprep.subr.bf16.mxu1 %v3102_v0 }
 0xaff   :  { %v2227_v21 = vpop.permute.xlu1 %2226 }
 0xb00   :  { %2873 = vmatmul.mubr.msk.bf16.vlgmr.msra.gmra.mxu1 %vm188_vm2, %v1809_v61  ;;  %2913 = vmatpush3.bf16.msra.mxu0 %v2227_v21 }
 0xb01   :  { %2883 = vmatpush3.bf16.msra.mxu1 %v1926_v3  ;;  %2884 = vmatprep.mubr.msk.bf16.mxu1 %vm3103_vm0, %v3102_v0 }
 0xb02   :  { %2894 = vmatprep.subr.bf16.mxu1 %v3102_v0  ;;  %2914 = vmatprep.subr.bf16.mxu0 %v3102_v0 }
 0xb05   :  { %v3066_v18 = vpop.eup %3065 }
 0xb06   :  { %v3695_v24 = vmul.f32 %v3066_v18, %v3609_v27 }
 0xb08   :  { %2885 = vmatmul.mubr.msk.bf16.vlgmr.msra.gmra.mxu1 %vm188_vm2, %v1919_v5  ;;  %v2139_v16 = vpack.c.bf16 %v3695_v24, %v3695_v24 }
 0xb09   :  { %2895 = vmatpush3.bf16.msra.mxu1 %v2036_v12  ;;  %2896 = vmatprep.mubr.msk.bf16.mxu1 %vm3103_vm0, %v3102_v0 }
 0xb0a   :  { %2906 = vmatprep.subr.bf16.mxu1 %v3102_v0 }
 0xb10   :  { %2897 = vmatmul.mubr.msk.bf16.vlgmr.msra.gmra.mxu1 %vm188_vm2, %v2029_v14 }
 0xb11   :  { %2907 = vmatpush3.bf16.msra.mxu1 %v2146_v28  ;;  %2908 = vmatprep.mubr.msk.bf16.mxu1 %vm3103_vm0, %v3102_v0 }
 0xb12   :  { %2920 = vmatprep.subr.bf16.mxu1 %v3102_v0 }
 0xb18   :  { %2909 = vmatmul.mubr.msk.bf16.vlgmr.msra.gmra.mxu1 %vm188_vm2, %v2139_v16 }
 0xb19   :  { %2924 = vmatprep.mubr.msk.bf16.mxu1 %vm3103_vm0, %v3102_v0 }
 0xb35   :  { %v1383_v23 = vpop.f32.mrf.mxu1 }
 0xb37   :  { %v2826_v25 = vpop.f32.mrf.mxu1 }
 0xb39   :  { %v1386_v15 = vpop.f32.mrf.mxu1 }
 0xb3b   :  { %v2827_v20 = vpop.f32.mrf.mxu1 }
 0xb71   :  { %v1494_v26 = vpop.f32.mrf.mxu1 }
 0xb73   :  { %v2838_v19 = vpop.f32.mrf.mxu1 }
 0xb75   :  { %v1497_v30 = vpop.f32.mrf.mxu1 }
 0xb77   :  { %v2839_v1 = vpop.f32.mrf.mxu1 }
 0xb7d   :  { %v1604_v27 = vpop.f32.mrf.mxu1 }
 0xb7f   :  { %v2850_v32 = vpop.f32.mrf.mxu1 }
 0xb81   :  { %v1607_v33 = vpop.f32.mrf.mxu1 }
 0xb82   :  { %v2585_v33 = vld [vmem:[#allocation2 + $0x6] ss:$0 sm:$0xff] }
 0xb83   :  { %v2851_v34 = vpop.f32.mrf.mxu1 }
 0xb85   :  { %v1714_v35 = vpop.f32.mrf.mxu1 }
 0xb87   :  { %v2862_v36 = vpop.f32.mrf.mxu1 }
 0xb89   :  { %v1717_v2 = vpop.f32.mrf.mxu1 }
 0xb8b   :  { %v2863_v37 = vpop.f32.mrf.mxu1 }
 0xbc0   :  { %v1852_v40 = vpop.f32.mrf.mxu1 }
 0xbc2   :  { %v2874_v41 = vpop.f32.mrf.mxu1 }
 0xbc4   :  { %v1855_v42 = vpop.f32.mrf.mxu1 }
 0xbc6   :  { %v2875_v29 = vpop.f32.mrf.mxu1 }
 0xbc8   :  { %v1962_v44 = vpop.f32.mrf.mxu1 }
 0xbc9   :  { %v2974_v8 = vpack.i.bf16 %v1962_v44, %v1494_v26 }
 0xbca   :  { %v2886_v45 = vpop.f32.mrf.mxu1 }
 0xbcb   :  { %2975 = vrot.lane.b32.xlu0 %v2974_v8, %s3101_s28 }
 0xbcc   :  { %v1965_v47 = vpop.f32.mrf.mxu1 }
 0xbce   :  { %v2887_v49 = vpop.f32.mrf.mxu1 }
 0xbd0   :  { %v2072_v50 = vpop.f32.mrf.mxu1 }
 0xbd1   :  { %v2979_v52 = vpack.i.bf16 %v2072_v50, %v1604_v27 }
 0xbd2   :  { %v2898_v53 = vpop.f32.mrf.mxu1 }
 0xbd3   :  { %2980 = vrot.lane.b32.xlu1 %v2979_v52, %s3116_s14 }
 0xbd4   :  { %v2075_v56 = vpop.f32.mrf.mxu1 }
 0xbd5   :  { %v2994_v56 = vld [vmem:[%s3813_s4 + $0x8] ss:$12 sps:$4 sm:$0xff]  }
 0xbd6   :  { %v2899_v58 = vpop.f32.mrf.mxu1 }
 0xbd7   :  { %2224 = vrot.lane.b32.xlu1 %v3076_v11, %s3115_s13  ;;  %v2995_v58 = vld [vmem:[%s3814_s5 + $0x18] sm:$0xff]  }
 0xbd8   :  { %v2182_v51 = vpop.f32.mrf.mxu1 }
 0xbd9   :  { %v2984_v61 = vpack.i.bf16 %v2182_v51, %v1714_v35 }
 0xbda   :  { %v2910_v63 = vpop.f32.mrf.mxu1 }
 0xbdb   :  { %2985 = vrot.lane.b32.xlu0 %v2984_v61, %s3117_s15 }
 0xbdc   :  { %v2185_v3 = vpop.f32.mrf.mxu1 }
 0xbde   :  { %v2911_v4 = vpop.f32.mrf.mxu1 }
 0xc3d   :  { %v2976_v6 = vpop.permute.xlu0 %2975 }
 0xc3e   :  { %v2978_v13 = vunpack.i.h.bf16 %v2976_v6  ;;  %v2977_v14 = vunpack.i.l.bf16 %v2976_v6 }
 0xc40   :  { %v2215_v25 = vsel %vm188_vm2, %v1852_v40, %v2978_v13  ;;  %v1747_v15 = vsel %vm188_vm2, %v1383_v23, %v2977_v14 }
 0xc45   :  { %v2981_v5 = vpop.permute.xlu1 %2980 }
 0xc46   :  { %v2983_v18 = vunpack.i.h.bf16 %v2981_v5  ;;  %v2982_v28 = vunpack.i.l.bf16 %v2981_v5 }
 0xc48   :  { %v2216_v19 = vsel %vm639_vm4, %v2215_v25, %v2983_v18  ;;  %v1748_v30 = vsel %vm639_vm4, %v1747_v15, %v2982_v28  ;;  %v2588_v28 = vld [vmem:[#allocation2 + $0x8] ss:$0 sm:$0xff] }
 0xc49   :  { %v2225_v12 = vpop.permute.xlu1 %2224 }
 0xc4a   :  { %2915 = vmatpush3.bf16.msra.mxu0 %v2225_v12  ;;  %v2587_v12 = vld [vmem:[#allocation2 + $0x7] ss:$0 sm:$0xff] }
 0xc4b   :  { %2928 = vmatprep.subr.bf16.mxu0 %v3102_v0 }
 0xc4d   :  { %v2986_v16 = vpop.permute.xlu0 %2985 }
 0xc4e   :  { %v2988_v20 = vunpack.i.h.bf16 %v2986_v16  ;;  %v2987_v26 = vunpack.i.l.bf16 %v2986_v16 }
 0xc50   :  { %v2217_v1 = vsel %vm641_vm5, %v2216_v19, %v2988_v20  ;;  %v1749_v27 = vsel %vm641_vm5, %v1748_v30, %v2987_v26  ;;  %v2996_v26 = vld [vmem:[%s3814_s5 + $0x10] sm:$0xff]   ;;  %v2997_v19 = vld [vmem:[%s3814_s5 + $0x8] sm:$0xff]   ;;  %v2998_v30 = vld [vmem:[%s3814_s5] sm:$0xff]  }
 0xc51   :  { %v2218_v32 = vpack.c.bf16 %v2217_v1, %v1749_v27  ;;  %v2589_v1 = vld [vmem:[#allocation2 + $0x9] ss:$0 sm:$0xff] }
 0xc53   :  { %2917 = vmatmul.mubr.msk.bf16.vlgmr.msra.gmra.mxu0 %vm71_vm1, %v2218_v32 }
 0xc54   :  { %2936 = vmatprep.mubr.msk.bf16.mxu0 %vm3103_vm0, %v3102_v0  ;;  %2929 = vmatpush3.bf16.msra.mxu0 %v2995_v58 }
 0xc55   :  { %2930 = vmatprep.subr.bf16.mxu0 %v3102_v0 }
 0xc58   :  { %2931 = vmatpush3.bf16.msra.mxu0 %v2996_v26 }
 0xc59   :  { %2932 = vmatprep.subr.bf16.mxu0 %v3102_v0 }
 0xc5c   :  { %2933 = vmatpush3.bf16.msra.mxu0 %v2997_v19  ;;  %v2599_v19 = vld [vmem:[#allocation2 + $0xb] ss:$0 sm:$0xff] }
 0xc5d   :  { %2934 = vmatprep.subr.bf16.mxu0 %v3102_v0 }
 0xc60   :  { %2935 = vmatpush3.bf16.msra.mxu0 %v2998_v30 }
 0xd13   :  { %v2267_v34 = vpop.f32.mrf.mxu0 }
 0xd14   :  { %v2268_v35 = vadd.f32 %v2585_v33, %v2267_v34 }
 0xd15   :  { %v2918_v23 = vpop.f32.mrf.mxu0 }
 0xd16   :  { %v2274_v36 = vadd.f32 %v2268_v35, %v3486_v54 }
 0xd17   :  { %v2270_v2 = vpop.f32.mrf.mxu0 }
 0xd18   :  { %v2271_v37 = vadd.f32 %v2585_v33, %v2270_v2  ;;  %v2278_v40 = vsel %vm71_vm1, %v2274_v36, 0.0 }
 0xd19   :  { %2279 = vadd.xlane.f32.xlu0 %v2278_v40  ;;  %v2919_v21 = vpop.f32.mrf.mxu0  ;;  %v2593_v40 = vld [vmem:[#allocation2 + $0xa] ss:$0 sm:$0xff] }
 0xd1a   :  { %v2275_v41 = vadd.f32 %v2271_v37, %v3488_v60  ;;  %v2993_v60 = vld [vmem:[%s3813_s4 + $0x20] ss:$12 sps:$4 sm:$0xff]  }
 0xd1b   :  { %2921 = vmatpush3.bf16.msra.mxu1 %v2993_v60 }
 0xd1c   :  { %v2281_v42 = vsel %vm71_vm1, %v2275_v41, 0.0  ;;  %2922 = vmatprep.subr.bf16.mxu1 %v3102_v0 }
 0xd1d   :  { %2282 = vadd.xlane.f32.xlu1 %v2281_v42 }
 0xd1f   :  { %2923 = vmatpush3.bf16.msra.mxu1 %v2994_v56 }
 0xda2   :  { %v2280_v29 = vpop.xlane.xlu0 %2279 }
 0xda3   :  { %v2284_v44 = vmul.f32 0.03125, %v2280_v29 }
 0xda5   :  { %v2286_v8 = vsub.f32 %v2274_v36, %v2284_v44 }
 0xda6   :  { %v2283_v45 = vpop.xlane.xlu1 %2282 }
 0xda7   :  { %v2285_v47 = vmul.f32 0.03125, %v2283_v45  ;;  %v2288_v49 = vmul.f32 %v2286_v8, %v2286_v8 }
 0xda9   :  { %v2287_v50 = vsub.f32 %v2275_v41, %v2285_v47  ;;  %v2290_v54 = vsel %vm71_vm1, %v2288_v49, 0.0 }
 0xdaa   :  { %2291 = vadd.xlane.f32.xlu0 %v2290_v54 }
 0xdab   :  { %v2289_v52 = vmul.f32 %v2287_v50, %v2287_v50 }
 0xdad   :  { %v2293_v53 = vsel %vm71_vm1, %v2289_v52, 0.0 }
 0xdae   :  { %2294 = vadd.xlane.f32.xlu0 %v2293_v53 }
 0xe33   :  { %v2292_v11 = vpop.xlane.xlu0 %2291 }
 0xe34   :  { %v2296_v51 = vmul.f32 0.03125, %v2292_v11 }
 0xe36   :  { %v2298_v61 = vadd.f32 1e-05, %v2296_v51 }
 0xe37   :  { %v2295_v63 = vpop.xlane.xlu0 %2294 }
 0xe38   :  { %3067 = vrsqrt.f32 %v2298_v61  ;;  %v2297_v3 = vmul.f32 0.03125, %v2295_v63 }
 0xe3a   :  { %v2299_v4 = vadd.f32 1e-05, %v2297_v3 }
 0xe3c   :  { %3069 = vrsqrt.f32 %v2299_v4 }
 0xe45   :  { %v3068_v5 = vpop.eup %3067 }
 0xe46   :  { %v2302_v6 = vmul.f32 %v3068_v5, %v2286_v8 }
 0xe48   :  { %v2308_v18 = vmul.f32 %v2587_v12, %v2302_v6 }
 0xe49   :  { %v3070_v13 = vpop.eup %3069 }
 0xe4a   :  { %v2303_v14 = vmul.f32 %v3070_v13, %v2287_v50  ;;  %v2314_v25 = vadd.f32 %v2588_v28, %v2308_v18 }
 0xe4c   :  { %v2309_v16 = vmul.f32 %v2587_v12, %v2303_v14 }
 0xe4e   :  { %v2315_v15 = vadd.f32 %v2588_v28, %v2309_v16 }
 0xe50   :  { %v2316_v20 = vpack.c.bf16 %v2315_v15, %v2314_v25 }
 0xe52   :  { %2925 = vmatmul.mubr.msk.bf16.vlgmr.msra.gmra.mxu1 %vm71_vm1, %v2316_v20 }
 0xf12   :  { %v2375_v27 = vpop.f32.mrf.mxu1 }
 0xf13   :  { %v2376_v33 = vadd.f32 %v2589_v1, %v2375_v27  ;;  %v2600_v27 = vld [vmem:[#allocation2 + $0xc] ss:$0 sm:$0xff] }
 0xf14   :  { %v2926_v32 = vpop.f32.mrf.mxu1 }
 0xf15   :  { %v2382_v36 = vmax.f32 %v2376_v33, 0.0 }
 0xf16   :  { %v2378_v34 = vpop.f32.mrf.mxu1 }
 0xf17   :  { %v2379_v35 = vadd.f32 %v2589_v1, %v2378_v34 }
 0xf18   :  { %v2927_v23 = vpop.f32.mrf.mxu1 }
 0xf19   :  { %v2383_v2 = vmax.f32 %v2379_v35, 0.0 }
 0xf1b   :  { %v2384_v37 = vpack.c.bf16 %v2383_v2, %v2382_v36 }
 0xf1d   :  { %2937 = vmatmul.mubr.msk.bf16.vlgmr.msra.gmra.mxu0 %vm2422_vm6, %v2384_v37 }
 0xfdd   :  { %v2460_v0 = vpop.f32.mrf.mxu0 }
 0xfde   :  { %v2461_v21 = vadd.f32 %v2593_v40, %v2460_v0 }
 0xfdf   :  { %v2938_v41 = vpop.f32.mrf.mxu0 }
 0xfe0   :  { %v2467_v42 = vadd.f32 %v2461_v21, %v2314_v25 }
 0xfe1   :  { %v2463_v29 = vpop.f32.mrf.mxu0 }
 0xfe2   :  { %v2464_v44 = vadd.f32 %v2593_v40, %v2463_v29  ;;  %v2471_v8 = vsel %vm71_vm1, %v2467_v42, 0.0 }
 0xfe3   :  { %2472 = vadd.xlane.f32.xlu1 %v2471_v8  ;;  %v2939_v45 = vpop.f32.mrf.mxu0 }
 0xfe4   :  { %v2468_v47 = vadd.f32 %v2464_v44, %v2315_v15 }
 0xfe6   :  { %v2474_v49 = vsel %vm71_vm1, %v2468_v47, 0.0 }
 0xfe7   :  { %2475 = vadd.xlane.f32.xlu0 %v2474_v49 }
 0xff4   :  { %627 = vrot.lane.b32.xlu1 %v3387_v43, %s3101_s28 }
 0xff8   :  { %635 = vrot.lane.b32.xlu1 %v3406_v55, %s3117_s15 }
 0xffc   :  { %1098 = vrot.lane.b32.xlu1 %v3426_v7, %s3101_s28 }
 0xffd   :  { %631 = vrot.lane.b32.xlu0 %v3397_v48, %s3116_s14 }
0x1000   :  { %1106 = vrot.lane.b32.xlu1 %v3445_v22, %s3117_s15 }
0x1001   :  { %1102 = vrot.lane.b32.xlu0 %v3436_v17, %s3116_s14 }
0x1004   :  { %1725 = vrot.lane.b32.xlu1 %v3646_v10, %s3116_s14 }
0x1005   :  { %1721 = vrot.lane.b32.xlu0 %v3636_v38, %s3101_s28 }
0x1008   :  { %2189 = vrot.lane.b32.xlu1 %v3676_v59, %s3101_s28 }
0x1009   :  { %1729 = vrot.lane.b32.xlu0 %v3656_v46, %s3117_s15 }
0x100c   :  { %2197 = vrot.lane.b32.xlu1 %v3695_v24, %s3117_s15 }
0x100d   :  { %2193 = vrot.lane.b32.xlu0 %v3686_v9, %s3116_s14 }
0x106c   :  { %v2473_v43 = vpop.xlane.xlu1 %2472 }
0x106d   :  { %v2477_v48 = vmul.f32 0.03125, %v2473_v43 }
0x106f   :  { %v2479_v55 = vsub.f32 %v2467_v42, %v2477_v48 }
0x1070   :  { %v628_v7 = vpop.permute.xlu1 %627  ;;  %v2476_v17 = vpop.xlane.xlu0 %2475 }
0x1071   :  { %v2478_v22 = vmul.f32 0.03125, %v2476_v17  ;;  %v2481_v10 = vmul.f32 %v2479_v55, %v2479_v55  ;;  %v638_v61 = vsel %vm188_vm2, %v3377_v39, %v628_v7 }
0x1073   :  { %v2480_v38 = vsub.f32 %v2468_v47, %v2478_v22  ;;  %v2483_v50 = vsel %vm71_vm1, %v2481_v10, 0.0 }
0x1074   :  { %v636_v59 = vpop.permute.xlu1 %635  ;;  %2484 = vadd.xlane.f32.xlu0 %v2483_v50  ;;  %v632_v54 = vpop.permute.xlu0 %631 }
0x1075   :  { %v2482_v46 = vmul.f32 %v2480_v38, %v2480_v38  ;;  %v640_v63 = vsel %vm639_vm4, %v638_v61, %v632_v54 }
0x1077   :  { %v2486_v52 = vsel %vm71_vm1, %v2482_v46, 0.0 }
0x1078   :  { %v1099_v24 = vpop.permute.xlu1 %1098  ;;  %2487 = vadd.xlane.f32.xlu1 %v2486_v52  ;;  %v1103_v53 = vpop.permute.xlu0 %1102 }
0x1079   :  { %v1109_v11 = vsel %vm188_vm2, %v3414_v62, %v1099_v24  ;;  %v642_v62 = vsel %vm641_vm5, %v640_v63, %v636_v59 }
0x107a   :  { %v1110_v3 = vsel %vm639_vm4, %v1109_v11, %v1103_v53 }
0x107c   :  { %v1107_v9 = vpop.permute.xlu1 %1106  ;;  %v1722_v60 = vpop.permute.xlu0 %1721 }
0x107d   :  { %v1111_v4 = vsel %vm641_vm5, %v1110_v3, %v1107_v9  ;;  %v1732_v12 = vsel %vm188_vm2, %v3618_v31, %v1722_v60 }
0x1080   :  { %v1726_v56 = vpop.permute.xlu1 %1725  ;;  %v1730_v58 = vpop.permute.xlu0 %1729 }
0x1081   :  { %v1733_v39 = vsel %vm639_vm4, %v1732_v12, %v1726_v56 }
0x1082   :  { %v1734_v28 = vsel %vm641_vm5, %v1733_v39, %v1730_v58 }
0x1084   :  { %v2190_v51 = vpop.permute.xlu1 %2189  ;;  %v2194_v6 = vpop.permute.xlu0 %2193 }
0x1085   :  { %v2200_v5 = vsel %vm188_vm2, %v3664_v57, %v2190_v51 }
0x1086   :  { %v2201_v14 = vsel %vm639_vm4, %v2200_v5, %v2194_v6 }
0x1088   :  { %v2198_v13 = vpop.permute.xlu1 %2197 }
0x1089   :  { %2513 = vrot.lane.b32.xlu1 %v1111_v4, %s3115_s13  ;;  %v2202_v18 = vsel %vm641_vm5, %v2201_v14, %v2198_v13 }
0x108a   :  { %2511 = vrot.lane.b32.xlu0 %v642_v62, %s3115_s13 }
0x108d   :  { %2521 = vrot.lane.b32.xlu1 %v2202_v18, %s3112_s10 }
0x108e   :  { %2519 = vrot.lane.b32.xlu0 %v1734_v28, %s3112_s10 }
0x10fd   :  { %v2485_v31 = vpop.xlane.xlu0 %2484 }
0x10fe   :  { %v2489_v57 = vmul.f32 0.03125, %v2485_v31 }
0x1100   :  { %v2491_v16 = vadd.f32 1e-05, %v2489_v57 }
0x1101   :  { %v2488_v25 = vpop.xlane.xlu1 %2487  ;;  %v2512_v1 = vpop.permute.xlu0 %2511 }
0x1102   :  { %3071 = vrsqrt.f32 %v2491_v16  ;;  %v2490_v15 = vmul.f32 0.03125, %v2488_v25 }
0x1104   :  { %v2492_v20 = vadd.f32 1e-05, %v2490_v15 }
0x1105   :  { %v2514_v23 = vpop.permute.xlu1 %2513  ;;  %v2520_v37 = vpop.permute.xlu0 %2519 }
0x1106   :  { %3073 = vrsqrt.f32 %v2492_v20 }
0x1109   :  { %v2522_v42 = vpop.permute.xlu1 %2521 }
0x110f   :  { %v3072_v26 = vpop.eup %3071 }
0x1110   :  { %v2495_v30 = vmul.f32 %v3072_v26, %v2479_v55 }
0x1112   :  { %v2501_v32 = vmul.f32 %v2599_v19, %v2495_v30 }
0x1113   :  { %v3074_v33 = vpop.eup %3073 }
0x1114   :  { %v2507_v34 = vadd.f32 %v2600_v27, %v2501_v32  ;;  %v2496_v35 = vmul.f32 %v3074_v33, %v2480_v38 }
0x1116   :  { %v2525_v36 = vsel %vm71_vm1, %v2507_v34, %v2512_v1  ;;  %v2502_v2 = vmul.f32 %v2599_v19, %v2496_v35 }
0x1117   :  { %v2527_v40 = vsel %vm2422_vm6, %v2525_v36, %v2520_v37 }
0x1118   :  { %v2508_v0 = vadd.f32 %v2600_v27, %v2502_v2  ;;  %v2530_v21 = vsel %vm2529_vm7, %v2527_v40, 0.0 }
0x1119   :  { %2532 = vst [vmem:[%s3816_s7] sm:$0xff] %v2530_v21 }
0x111a   :  { %v2526_v41 = vsel %vm71_vm1, %v2508_v0, %v2514_v23 }
0x111b   :  { %v2528_v29 = vsel %vm2422_vm6, %v2526_v41, %v2522_v42 }
0x111c   :  { %v2531_v44 = vsel %vm2529_vm7, %v2528_v29, 0.0 }
0x111d   :  { %2533 = vst [vmem:[%s3816_s7 + $0x8] sm:$0xff] %v2531_v44 }
0x111e   :  { %2538 = vsyncpa [#allocation3], 1 }

</bundles_post_ra>
